<compile_context>
chip_gen: v6e
topology: v6e:2x2x1
jax: 0.10.0
libtpu: 0.0.40
codegen_flags: <defaults>
</compile_context>

<pallas_src>
import jax
import jax.numpy as jnp
from jax.experimental import pallas as pl
from jax.experimental.pallas import tpu as pltpu

# ----- small, deterministic problem sizes consistent with the module -----
S = 8                              # max sequence length
B = 2                              # batch size
ONLINE_DIM = 8                     # parameters.online_dim
INPUT_DIM = 3 + 1 + ONLINE_DIM     # Add_Traj_Representation_flag = False branch
HID = 32                           # parameters.hid_dim
PRO_IN = 5                         # parameters.pro_input_dim (col 0 = uid)
PRO_OUT = 16                       # parameters.pro_output_dim
UID_NUM = 10                       # parameters.uid_num


# ----------------------- fused Encoder forward kernel -----------------------
def encoder_kernel(xf_ref, mask_ref, wih_ref, whh_ref, bias_ref,
                   head_in_ref, wfc_ref, whid_ref,
                   out_ref, hid_ref):
    f32 = jnp.float32
    bf16 = jnp.bfloat16

    bias = bias_ref[...]                                  # (6, HID) f32
    # rows: 0 = b_ih_r+b_hh_r, 1 = b_ih_z+b_hh_z, 2 = b_ih_n, 3 = b_hh_n,
    #       4 = b_hid, 5 = b_fc_out (padded to HID lanes)

    # ---- hoisted + fused input projection: ONE MXU push for all steps/gates ----
    gi = jnp.dot(xf_ref[...], wih_ref[...], preferred_element_type=f32)   # (S*B, 3H)
    # gate split + bias add + tile-aligned (S,B,H) relayout, all OUTSIDE the loop
    gi_r = (gi[:, 0 * HID:1 * HID] + bias[0:1, :]).reshape(S, B, HID)
    gi_z = (gi[:, 1 * HID:2 * HID] + bias[1:2, :]).reshape(S, B, HID)
    gi_n = (gi[:, 2 * HID:3 * HID] + bias[2:3, :]).reshape(S, B, HID)

    whh = whh_ref[...]                                    # (H, 3H) bf16, fused gates
    b_hn = jnp.broadcast_to(bias[3:4, :], (B, HID))       # hoisted broadcast
    mask = jnp.broadcast_to(mask_ref[...], (S, B, HID))   # hoisted (S,B,1)->(S,B,H)

    # ---- GRU recurrence: ONE fused MXU push per step (gate order r, z, n) ----
    h = jnp.zeros((B, HID), f32)                          # nn.GRU default h0 = 0
    outs = []
    for t in range(S):
        gh = jnp.dot(h.astype(bf16), whh, preferred_element_type=f32)     # (B, 3H)
        r = jax.nn.sigmoid(gi_r[t] + gh[:, 0 * HID:1 * HID])              # reset
        z = jax.nn.sigmoid(gi_z[t] + gh[:, 1 * HID:2 * HID])              # update
        n = jnp.tanh(gi_n[t] + r * (gh[:, 2 * HID:3 * HID] + b_hn))       # candidate
        h_new = n + z * (h - n)                           # == (1-z)*n + z*h
        m = mask[t]                                       # (B, H), 1.0 while t < len
        outs.append(m * h_new)                            # padded steps -> 0
        h = h + m * (h_new - h)                           # freeze finished sequences
    out_ref[...] = jnp.stack(outs, axis=0)                # single batched store

    # ---- fused Extra_MLP + fc_hid head (pro_features_flag branch) ----
    head_in = head_in_ref[...]                            # (B, PRO_OUT + PRO_IN-1)
    uid_emb = head_in[:, :PRO_OUT]
    pro_rest = head_in[:, PRO_OUT:].astype(bf16)
    extra = uid_emb + jnp.tanh(
        jnp.dot(pro_rest, wfc_ref[...], preferred_element_type=f32)
        + bias[5:6, :PRO_OUT])
    # fc_hid(cat([extra, hidden], -1)) == extra @ W_e + hidden @ W_h + b
    whid = whid_ref[...]                                  # (PRO_OUT + HID, HID) bf16
    hid_ref[...] = jnp.tanh(
        jnp.dot(extra.astype(bf16), whid[:PRO_OUT, :], preferred_element_type=f32)
        + jnp.dot(h.astype(bf16), whid[PRO_OUT:, :], preferred_element_type=f32)
        + bias[4:5, :])


def run_encoder(x_flat_bf16, mask, head_in, packed):
    inputs = (x_flat_bf16, mask,
              packed["wih"], packed["whh"], packed["bias"],
              head_in, packed["wfc"], packed["whid"])

    def full_spec(shape):
        nd = len(shape)
        return pl.BlockSpec(shape, lambda i, _nd=nd: (0,) * _nd)

    out_shapes = (jax.ShapeDtypeStruct((S, B, HID), jnp.float32),
                  jax.ShapeDtypeStruct((B, HID), jnp.float32))

    # Advisory cost estimate so XLA does not over-schedule around a tiny call.
    flops = (2 * S * B * INPUT_DIM * 3 * HID        # hoisted input projection
             + 2 * S * B * HID * 3 * HID            # recurrence h @ W_hh
             + 2 * B * (PRO_IN - 1) * PRO_OUT       # fc_out
             + 2 * B * (PRO_OUT + HID) * HID)       # fc_hid
    transcendentals = 3 * S * B * HID + B * PRO_OUT + B * HID
    bytes_accessed = (sum(int(a.size) * a.dtype.itemsize for a in inputs)
                      + 4 * (S * B * HID + B * HID))

    grid_spec = pltpu.PrefetchScalarGridSpec(
        num_scalar_prefetch=0,
        grid=(1,),                                  # single grid step; time loop in-kernel
        in_specs=[full_spec(a.shape) for a in inputs],
        out_specs=[full_spec((S, B, HID)), full_spec((B, HID))],
    )
    return pl.pallas_call(
        encoder_kernel,
        out_shape=out_shapes,
        grid_spec=grid_spec,
        compiler_params=pltpu.CompilerParams(dimension_semantics=("arbitrary",)),
        cost_estimate=pl.CostEstimate(flops=flops,
                                      transcendentals=transcendentals,
                                      bytes_accessed=bytes_accessed),
    )(*inputs)


# ------------------------------ parameter init ------------------------------
def init_params(key):
    ks = jax.random.split(key, 17)
    gru_b = 1.0 / jnp.sqrt(HID)
    fc_b = 1.0 / jnp.sqrt(PRO_IN - 1)
    hid_b = 1.0 / jnp.sqrt(HID + PRO_OUT)

    def u(k, shape, b):
        return jax.random.uniform(k, shape, jnp.float32, -b, b)

    return {
        # nn.GRU weights, stored pre-transposed and split per gate
        # (PyTorch gate order [r, z, n]): W_ih (3H,D) -> wih_* (D,H); W_hh (3H,H) -> whh_* (H,H)
        "wih_r": u(ks[0], (INPUT_DIM, HID), gru_b),
        "wih_z": u(ks[1], (INPUT_DIM, HID), gru_b),
        "wih_n": u(ks[2], (INPUT_DIM, HID), gru_b),
        "whh_r": u(ks[3], (HID, HID), gru_b),
        "whh_z": u(ks[4], (HID, HID), gru_b),
        "whh_n": u(ks[5], (HID, HID), gru_b),
        "b_ih_r": u(ks[6], (1, HID), gru_b),
        "b_ih_z": u(ks[7], (1, HID), gru_b),
        "b_ih_n": u(ks[8], (1, HID), gru_b),
        "b_hh_r": u(ks[9], (1, HID), gru_b),
        "b_hh_z": u(ks[10], (1, HID), gru_b),
        "b_hh_n": u(ks[11], (1, HID), gru_b),
        # Extra_MLP
        "emb_table": jax.random.normal(ks[12], (UID_NUM, PRO_OUT), jnp.float32),
        "w_fc_out": u(ks[13], (PRO_IN - 1, PRO_OUT), fc_b),
        "b_fc_out": u(ks[14], (1, PRO_OUT), fc_b),
        # fc_hid: Linear(PRO_OUT + HID, HID); split into [extra | hidden] column blocks
        "w_hid_e": u(ks[15], (PRO_OUT, HID), hid_b),
        "w_hid_h": u(ks[16], (HID, HID), hid_b),
        "b_hid": jnp.zeros((1, HID), jnp.float32),
    }


def prepare_packed_params(p):
    """One-time packing: fused/bf16 MXU weights + one stacked f32 bias array."""
    bf16 = jnp.bfloat16
    bias = jnp.concatenate([
        p["b_ih_r"] + p["b_hh_r"],                         # r-gate biases pre-summed
        p["b_ih_z"] + p["b_hh_z"],                         # z-gate biases pre-summed
        p["b_ih_n"],                                       # b_in (outside r*(.))
        p["b_hh_n"],                                       # b_hn (inside r*(.))
        p["b_hid"],
        jnp.pad(p["b_fc_out"], ((0, 0), (0, HID - PRO_OUT))),
    ], axis=0)                                             # (6, HID) f32
    return {
        "wih": jnp.concatenate([p["wih_r"], p["wih_z"], p["wih_n"]], axis=1).astype(bf16),
        "whh": jnp.concatenate([p["whh_r"], p["whh_z"], p["whh_n"]], axis=1).astype(bf16),
        "bias": bias,
        "wfc": p["w_fc_out"].astype(bf16),
        "whid": jnp.concatenate([p["w_hid_e"], p["w_hid_h"]], axis=0).astype(bf16),
        "emb_table": p["emb_table"],
    }


# ------------------------------- forward glue -------------------------------
def encoder_forward(packed, src, src_len, pro_features, src_road_feas, src_point_feas):
    # src = cat([src, src_point_feas, src_road_feas], dim=-1)   -> (S, B, D)
    x = jnp.concatenate([src, src_point_feas, src_road_feas], axis=-1)
    x_flat = x.reshape(S * B, INPUT_DIM).astype(jnp.bfloat16)  # bf16 MXU operand

    # pack_padded_sequence semantics -> per-(t, b) validity mask (built once, outside kernel)
    lens = src_len.astype(jnp.int32)
    mask = (jnp.arange(S, dtype=jnp.int32)[:, None] < lens[None, :]
            ).astype(jnp.float32)[:, :, None]                  # (S, B, 1)

    # Extra_MLP embedding gather (plain XLA glue) + packed head input
    uid = pro_features[:, 0].astype(jnp.int32)
    uid_emb = jnp.take(packed["emb_table"], uid, axis=0)       # (B, PRO_OUT)
    head_in = jnp.concatenate([uid_emb, pro_features[:, 1:]], axis=-1)  # (B, PRO_OUT+PRO_IN-1)

    outputs, hidden = run_encoder(x_flat, mask, head_in, packed)
    return outputs, hidden[None, :, :]                         # (S,B,H), (1,B,H)


# TODO(synk): Add_Traj_Representation / Add_Graph_Representation /
# Add_transformer_ST branches (TimeEmbedding with datetime, grid_dict lookup,
# torch_geometric GAT/GCN, Co_Att, Transformer) are disabled by flags and not
# translated.

if __name__ == "__main__":
    key = jax.random.PRNGKey(0)
    kp, k1, k2, k3, k4 = jax.random.split(key, 5)

    params = init_params(kp)
    packed = prepare_packed_params(params)

    src = jax.random.normal(k1, (S, B, 3), jnp.float32)
    src_point_feas = jax.random.normal(k2, (S, B, 1), jnp.float32)
    src_road_feas = jax.random.normal(k3, (S, B, ONLINE_DIM), jnp.float32)
    src_len = jnp.array([8, 6], jnp.int32)                     # descending (pack_padded contract)
    pro_cont = jax.random.normal(k4, (B, PRO_IN - 1), jnp.float32)
    pro_uid = jnp.array([[3.0], [7.0]], jnp.float32)
    pro_features = jnp.concatenate([pro_uid, pro_cont], axis=-1)   # (B, PRO_IN)

    outputs, hidden = encoder_forward(packed, src, src_len, pro_features,
                                      src_road_feas, src_point_feas)
    jax.block_until_ready((outputs, hidden))
    assert outputs.shape == (S, B, HID) and hidden.shape == (1, B, HID)
    print("KERNEL_OK")
</pallas_src>

<mosaic_0001>
module attributes {stable_mosaic.version = 11 : i64} {
  func.func @encoder_kernel(%arg0: i32, %arg1: memref<16x12xbf16, #tpu.memory_space<vmem>>, %arg2: memref<8x2x1xf32, #tpu.memory_space<vmem>>, %arg3: memref<12x96xbf16, #tpu.memory_space<vmem>>, %arg4: memref<32x96xbf16, #tpu.memory_space<vmem>>, %arg5: memref<6x32xf32, #tpu.memory_space<vmem>>, %arg6: memref<2x20xf32, #tpu.memory_space<vmem>>, %arg7: memref<4x16xbf16, #tpu.memory_space<vmem>>, %arg8: memref<48x32xbf16, #tpu.memory_space<vmem>>, %arg9: memref<8x2x32xf32, #tpu.memory_space<vmem>>, %arg10: memref<2x32xf32, #tpu.memory_space<vmem>>) attributes {dimension_semantics = [#tpu.dimension_semantics<arbitrary>], iteration_bounds = array<i64: 1>, scalar_prefetch = 0 : i64, scratch_operands = 0 : i64, tpu.core_type = #tpu.core_type<tc>, window_params = [{pipeline_mode = #tpu.pipeline_mode<synchronous>, transform_indices = @transform_0, window_bounds = array<i64: 16, 12>}, {pipeline_mode = #tpu.pipeline_mode<synchronous>, transform_indices = @transform_1, window_bounds = array<i64: 8, 2, 1>}, {pipeline_mode = #tpu.pipeline_mode<synchronous>, transform_indices = @transform_2, window_bounds = array<i64: 12, 96>}, {pipeline_mode = #tpu.pipeline_mode<synchronous>, transform_indices = @transform_3, window_bounds = array<i64: 32, 96>}, {pipeline_mode = #tpu.pipeline_mode<synchronous>, transform_indices = @transform_4, window_bounds = array<i64: 6, 32>}, {pipeline_mode = #tpu.pipeline_mode<synchronous>, transform_indices = @transform_5, window_bounds = array<i64: 2, 20>}, {pipeline_mode = #tpu.pipeline_mode<synchronous>, transform_indices = @transform_6, window_bounds = array<i64: 4, 16>}, {pipeline_mode = #tpu.pipeline_mode<synchronous>, transform_indices = @transform_7, window_bounds = array<i64: 48, 32>}, {pipeline_mode = #tpu.pipeline_mode<synchronous>, transform_indices = @transform_8, window_bounds = array<i64: 8, 2, 32>}, {pipeline_mode = #tpu.pipeline_mode<synchronous>, transform_indices = @transform_9, window_bounds = array<i64: 2, 32>}]} {
    %c0 = arith.constant 0 : index
    %c0_0 = arith.constant 0 : index
    %0 = vector.load %arg5[%c0, %c0_0] : memref<6x32xf32, #tpu.memory_space<vmem>>, vector<6x32xf32>
    %c0_1 = arith.constant 0 : index
    %c0_2 = arith.constant 0 : index
    %1 = vector.load %arg1[%c0_1, %c0_2] : memref<16x12xbf16, #tpu.memory_space<vmem>>, vector<16x12xbf16>
    %c0_3 = arith.constant 0 : index
    %c0_4 = arith.constant 0 : index
    %2 = vector.load %arg3[%c0_3, %c0_4] : memref<12x96xbf16, #tpu.memory_space<vmem>>, vector<12x96xbf16>
    %cst = arith.constant dense<0.000000e+00> : vector<16x96xf32>
    %3 = tpu.matmul %1, %2, %cst {dimension_numbers = #tpu.dot_dimension_numbers<[1], [0], [0], [1], [0, 0, 1, 1], [], []>} : vector<16x12xbf16>, vector<12x96xbf16>, vector<16x96xf32> -> vector<16x96xf32>
    %4 = vector.extract_strided_slice %3 {offsets = [0, 0], sizes = [16, 32], strides = [1, 1]} : vector<16x96xf32> to vector<16x32xf32>
    %5 = vector.extract_strided_slice %0 {offsets = [0, 0], sizes = [1, 32], strides = [1, 1]} : vector<6x32xf32> to vector<1x32xf32>
    %6 = vector.broadcast %5 : vector<1x32xf32> to vector<16x32xf32>
    %7 = arith.addf %4, %6 : vector<16x32xf32>
    %8 = vector.shape_cast %7 : vector<16x32xf32> to vector<8x2x32xf32>
    %9 = vector.extract_strided_slice %3 {offsets = [0, 32], sizes = [16, 32], strides = [1, 1]} : vector<16x96xf32> to vector<16x32xf32>
    %10 = vector.extract_strided_slice %0 {offsets = [1, 0], sizes = [1, 32], strides = [1, 1]} : vector<6x32xf32> to vector<1x32xf32>
    %11 = vector.broadcast %10 : vector<1x32xf32> to vector<16x32xf32>
    %12 = arith.addf %9, %11 : vector<16x32xf32>
    %13 = vector.shape_cast %12 : vector<16x32xf32> to vector<8x2x32xf32>
    %14 = vector.extract_strided_slice %3 {offsets = [0, 64], sizes = [16, 32], strides = [1, 1]} : vector<16x96xf32> to vector<16x32xf32>
    %15 = vector.extract_strided_slice %0 {offsets = [2, 0], sizes = [1, 32], strides = [1, 1]} : vector<6x32xf32> to vector<1x32xf32>
    %16 = vector.broadcast %15 : vector<1x32xf32> to vector<16x32xf32>
    %17 = arith.addf %14, %16 : vector<16x32xf32>
    %18 = vector.shape_cast %17 : vector<16x32xf32> to vector<8x2x32xf32>
    %c0_5 = arith.constant 0 : index
    %c0_6 = arith.constant 0 : index
    %19 = vector.load %arg4[%c0_5, %c0_6] : memref<32x96xbf16, #tpu.memory_space<vmem>>, vector<32x96xbf16>
    %20 = vector.extract_strided_slice %0 {offsets = [3, 0], sizes = [1, 32], strides = [1, 1]} : vector<6x32xf32> to vector<1x32xf32>
    %21 = vector.shape_cast %20 : vector<1x32xf32> to vector<1x32xf32>
    %22 = vector.broadcast %21 : vector<1x32xf32> to vector<2x32xf32>
    %c0_7 = arith.constant 0 : index
    %c0_8 = arith.constant 0 : index
    %c0_9 = arith.constant 0 : index
    %23 = vector.load %arg2[%c0_7, %c0_8, %c0_9] : memref<8x2x1xf32, #tpu.memory_space<vmem>>, vector<8x2x1xf32>
    %24 = vector.shape_cast %23 : vector<8x2x1xf32> to vector<8x2x1xf32>
    %25 = vector.broadcast %24 : vector<8x2x1xf32> to vector<8x2x32xf32>
    %cst_10 = arith.constant 0.000000e+00 : f32
    %26 = vector.broadcast %cst_10 : f32 to vector<2x32xf32>
    %27 = arith.truncf %26 : vector<2x32xf32> to vector<2x32xbf16>
    %cst_11 = arith.constant dense<0.000000e+00> : vector<2x96xf32>
    %28 = tpu.matmul %27, %19, %cst_11 {dimension_numbers = #tpu.dot_dimension_numbers<[1], [0], [0], [1], [0, 0, 1, 1], [], []>} : vector<2x32xbf16>, vector<32x96xbf16>, vector<2x96xf32> -> vector<2x96xf32>
    %29 = vector.extract_strided_slice %8 {offsets = [0, 0, 0], sizes = [1, 2, 32], strides = [1, 1, 1]} : vector<8x2x32xf32> to vector<1x2x32xf32>
    %30 = vector.shape_cast %29 : vector<1x2x32xf32> to vector<2x32xf32>
    %31 = vector.extract_strided_slice %28 {offsets = [0, 0], sizes = [2, 32], strides = [1, 1]} : vector<2x96xf32> to vector<2x32xf32>
    %32 = arith.addf %30, %31 : vector<2x32xf32>
    %33 = arith.negf %32 : vector<2x32xf32>
    %34 = math.exp %33 : vector<2x32xf32>
    %cst_12 = arith.constant 1.000000e+00 : f32
    %35 = vector.broadcast %cst_12 : f32 to vector<2x32xf32>
    %36 = arith.addf %35, %34 : vector<2x32xf32>
    %37 = arith.divf %35, %36 : vector<2x32xf32>
    %38 = vector.extract_strided_slice %13 {offsets = [0, 0, 0], sizes = [1, 2, 32], strides = [1, 1, 1]} : vector<8x2x32xf32> to vector<1x2x32xf32>
    %39 = vector.shape_cast %38 : vector<1x2x32xf32> to vector<2x32xf32>
    %40 = vector.extract_strided_slice %28 {offsets = [0, 32], sizes = [2, 32], strides = [1, 1]} : vector<2x96xf32> to vector<2x32xf32>
    %41 = arith.addf %39, %40 : vector<2x32xf32>
    %42 = arith.negf %41 : vector<2x32xf32>
    %43 = math.exp %42 : vector<2x32xf32>
    %cst_13 = arith.constant 1.000000e+00 : f32
    %44 = vector.broadcast %cst_13 : f32 to vector<2x32xf32>
    %45 = arith.addf %44, %43 : vector<2x32xf32>
    %46 = arith.divf %44, %45 : vector<2x32xf32>
    %47 = vector.extract_strided_slice %18 {offsets = [0, 0, 0], sizes = [1, 2, 32], strides = [1, 1, 1]} : vector<8x2x32xf32> to vector<1x2x32xf32>
    %48 = vector.shape_cast %47 : vector<1x2x32xf32> to vector<2x32xf32>
    %49 = vector.extract_strided_slice %28 {offsets = [0, 64], sizes = [2, 32], strides = [1, 1]} : vector<2x96xf32> to vector<2x32xf32>
    %50 = arith.addf %49, %22 : vector<2x32xf32>
    %51 = arith.mulf %37, %50 : vector<2x32xf32>
    %52 = arith.addf %48, %51 : vector<2x32xf32>
    %53 = math.tanh %52 : vector<2x32xf32>
    %54 = arith.subf %26, %53 : vector<2x32xf32>
    %55 = arith.mulf %46, %54 : vector<2x32xf32>
    %56 = arith.addf %53, %55 : vector<2x32xf32>
    %57 = vector.extract_strided_slice %25 {offsets = [0, 0, 0], sizes = [1, 2, 32], strides = [1, 1, 1]} : vector<8x2x32xf32> to vector<1x2x32xf32>
    %58 = vector.shape_cast %57 : vector<1x2x32xf32> to vector<2x32xf32>
    %59 = arith.mulf %58, %56 : vector<2x32xf32>
    %60 = arith.subf %56, %26 : vector<2x32xf32>
    %61 = arith.mulf %58, %60 : vector<2x32xf32>
    %62 = arith.addf %26, %61 : vector<2x32xf32>
    %63 = arith.truncf %62 : vector<2x32xf32> to vector<2x32xbf16>
    %cst_14 = arith.constant dense<0.000000e+00> : vector<2x96xf32>
    %64 = tpu.matmul %63, %19, %cst_14 {dimension_numbers = #tpu.dot_dimension_numbers<[1], [0], [0], [1], [0, 0, 1, 1], [], []>} : vector<2x32xbf16>, vector<32x96xbf16>, vector<2x96xf32> -> vector<2x96xf32>
    %65 = vector.extract_strided_slice %8 {offsets = [1, 0, 0], sizes = [1, 2, 32], strides = [1, 1, 1]} : vector<8x2x32xf32> to vector<1x2x32xf32>
    %66 = vector.shape_cast %65 : vector<1x2x32xf32> to vector<2x32xf32>
    %67 = vector.extract_strided_slice %64 {offsets = [0, 0], sizes = [2, 32], strides = [1, 1]} : vector<2x96xf32> to vector<2x32xf32>
    %68 = arith.addf %66, %67 : vector<2x32xf32>
    %69 = arith.negf %68 : vector<2x32xf32>
    %70 = math.exp %69 : vector<2x32xf32>
    %cst_15 = arith.constant 1.000000e+00 : f32
    %71 = vector.broadcast %cst_15 : f32 to vector<2x32xf32>
    %72 = arith.addf %71, %70 : vector<2x32xf32>
    %73 = arith.divf %71, %72 : vector<2x32xf32>
    %74 = vector.extract_strided_slice %13 {offsets = [1, 0, 0], sizes = [1, 2, 32], strides = [1, 1, 1]} : vector<8x2x32xf32> to vector<1x2x32xf32>
    %75 = vector.shape_cast %74 : vector<1x2x32xf32> to vector<2x32xf32>
    %76 = vector.extract_strided_slice %64 {offsets = [0, 32], sizes = [2, 32], strides = [1, 1]} : vector<2x96xf32> to vector<2x32xf32>
    %77 = arith.addf %75, %76 : vector<2x32xf32>
    %78 = arith.negf %77 : vector<2x32xf32>
    %79 = math.exp %78 : vector<2x32xf32>
    %cst_16 = arith.constant 1.000000e+00 : f32
    %80 = vector.broadcast %cst_16 : f32 to vector<2x32xf32>
    %81 = arith.addf %80, %79 : vector<2x32xf32>
    %82 = arith.divf %80, %81 : vector<2x32xf32>
    %83 = vector.extract_strided_slice %18 {offsets = [1, 0, 0], sizes = [1, 2, 32], strides = [1, 1, 1]} : vector<8x2x32xf32> to vector<1x2x32xf32>
    %84 = vector.shape_cast %83 : vector<1x2x32xf32> to vector<2x32xf32>
    %85 = vector.extract_strided_slice %64 {offsets = [0, 64], sizes = [2, 32], strides = [1, 1]} : vector<2x96xf32> to vector<2x32xf32>
    %86 = arith.addf %85, %22 : vector<2x32xf32>
    %87 = arith.mulf %73, %86 : vector<2x32xf32>
    %88 = arith.addf %84, %87 : vector<2x32xf32>
    %89 = math.tanh %88 : vector<2x32xf32>
    %90 = arith.subf %62, %89 : vector<2x32xf32>
    %91 = arith.mulf %82, %90 : vector<2x32xf32>
    %92 = arith.addf %89, %91 : vector<2x32xf32>
    %93 = vector.extract_strided_slice %25 {offsets = [1, 0, 0], sizes = [1, 2, 32], strides = [1, 1, 1]} : vector<8x2x32xf32> to vector<1x2x32xf32>
    %94 = vector.shape_cast %93 : vector<1x2x32xf32> to vector<2x32xf32>
    %95 = arith.mulf %94, %92 : vector<2x32xf32>
    %96 = arith.subf %92, %62 : vector<2x32xf32>
    %97 = arith.mulf %94, %96 : vector<2x32xf32>
    %98 = arith.addf %62, %97 : vector<2x32xf32>
    %99 = arith.truncf %98 : vector<2x32xf32> to vector<2x32xbf16>
    %cst_17 = arith.constant dense<0.000000e+00> : vector<2x96xf32>
    %100 = tpu.matmul %99, %19, %cst_17 {dimension_numbers = #tpu.dot_dimension_numbers<[1], [0], [0], [1], [0, 0, 1, 1], [], []>} : vector<2x32xbf16>, vector<32x96xbf16>, vector<2x96xf32> -> vector<2x96xf32>
    %101 = vector.extract_strided_slice %8 {offsets = [2, 0, 0], sizes = [1, 2, 32], strides = [1, 1, 1]} : vector<8x2x32xf32> to vector<1x2x32xf32>
    %102 = vector.shape_cast %101 : vector<1x2x32xf32> to vector<2x32xf32>
    %103 = vector.extract_strided_slice %100 {offsets = [0, 0], sizes = [2, 32], strides = [1, 1]} : vector<2x96xf32> to vector<2x32xf32>
    %104 = arith.addf %102, %103 : vector<2x32xf32>
    %105 = arith.negf %104 : vector<2x32xf32>
    %106 = math.exp %105 : vector<2x32xf32>
    %cst_18 = arith.constant 1.000000e+00 : f32
    %107 = vector.broadcast %cst_18 : f32 to vector<2x32xf32>
    %108 = arith.addf %107, %106 : vector<2x32xf32>
    %109 = arith.divf %107, %108 : vector<2x32xf32>
    %110 = vector.extract_strided_slice %13 {offsets = [2, 0, 0], sizes = [1, 2, 32], strides = [1, 1, 1]} : vector<8x2x32xf32> to vector<1x2x32xf32>
    %111 = vector.shape_cast %110 : vector<1x2x32xf32> to vector<2x32xf32>
    %112 = vector.extract_strided_slice %100 {offsets = [0, 32], sizes = [2, 32], strides = [1, 1]} : vector<2x96xf32> to vector<2x32xf32>
    %113 = arith.addf %111, %112 : vector<2x32xf32>
    %114 = arith.negf %113 : vector<2x32xf32>
    %115 = math.exp %114 : vector<2x32xf32>
    %cst_19 = arith.constant 1.000000e+00 : f32
    %116 = vector.broadcast %cst_19 : f32 to vector<2x32xf32>
    %117 = arith.addf %116, %115 : vector<2x32xf32>
    %118 = arith.divf %116, %117 : vector<2x32xf32>
    %119 = vector.extract_strided_slice %18 {offsets = [2, 0, 0], sizes = [1, 2, 32], strides = [1, 1, 1]} : vector<8x2x32xf32> to vector<1x2x32xf32>
    %120 = vector.shape_cast %119 : vector<1x2x32xf32> to vector<2x32xf32>
    %121 = vector.extract_strided_slice %100 {offsets = [0, 64], sizes = [2, 32], strides = [1, 1]} : vector<2x96xf32> to vector<2x32xf32>
    %122 = arith.addf %121, %22 : vector<2x32xf32>
    %123 = arith.mulf %109, %122 : vector<2x32xf32>
    %124 = arith.addf %120, %123 : vector<2x32xf32>
    %125 = math.tanh %124 : vector<2x32xf32>
    %126 = arith.subf %98, %125 : vector<2x32xf32>
    %127 = arith.mulf %118, %126 : vector<2x32xf32>
    %128 = arith.addf %125, %127 : vector<2x32xf32>
    %129 = vector.extract_strided_slice %25 {offsets = [2, 0, 0], sizes = [1, 2, 32], strides = [1, 1, 1]} : vector<8x2x32xf32> to vector<1x2x32xf32>
    %130 = vector.shape_cast %129 : vector<1x2x32xf32> to vector<2x32xf32>
    %131 = arith.mulf %130, %128 : vector<2x32xf32>
    %132 = arith.subf %128, %98 : vector<2x32xf32>
    %133 = arith.mulf %130, %132 : vector<2x32xf32>
    %134 = arith.addf %98, %133 : vector<2x32xf32>
    %135 = arith.truncf %134 : vector<2x32xf32> to vector<2x32xbf16>
    %cst_20 = arith.constant dense<0.000000e+00> : vector<2x96xf32>
    %136 = tpu.matmul %135, %19, %cst_20 {dimension_numbers = #tpu.dot_dimension_numbers<[1], [0], [0], [1], [0, 0, 1, 1], [], []>} : vector<2x32xbf16>, vector<32x96xbf16>, vector<2x96xf32> -> vector<2x96xf32>
    %137 = vector.extract_strided_slice %8 {offsets = [3, 0, 0], sizes = [1, 2, 32], strides = [1, 1, 1]} : vector<8x2x32xf32> to vector<1x2x32xf32>
    %138 = vector.shape_cast %137 : vector<1x2x32xf32> to vector<2x32xf32>
    %139 = vector.extract_strided_slice %136 {offsets = [0, 0], sizes = [2, 32], strides = [1, 1]} : vector<2x96xf32> to vector<2x32xf32>
    %140 = arith.addf %138, %139 : vector<2x32xf32>
    %141 = arith.negf %140 : vector<2x32xf32>
    %142 = math.exp %141 : vector<2x32xf32>
    %cst_21 = arith.constant 1.000000e+00 : f32
    %143 = vector.broadcast %cst_21 : f32 to vector<2x32xf32>
    %144 = arith.addf %143, %142 : vector<2x32xf32>
    %145 = arith.divf %143, %144 : vector<2x32xf32>
    %146 = vector.extract_strided_slice %13 {offsets = [3, 0, 0], sizes = [1, 2, 32], strides = [1, 1, 1]} : vector<8x2x32xf32> to vector<1x2x32xf32>
    %147 = vector.shape_cast %146 : vector<1x2x32xf32> to vector<2x32xf32>
    %148 = vector.extract_strided_slice %136 {offsets = [0, 32], sizes = [2, 32], strides = [1, 1]} : vector<2x96xf32> to vector<2x32xf32>
    %149 = arith.addf %147, %148 : vector<2x32xf32>
    %150 = arith.negf %149 : vector<2x32xf32>
    %151 = math.exp %150 : vector<2x32xf32>
    %cst_22 = arith.constant 1.000000e+00 : f32
    %152 = vector.broadcast %cst_22 : f32 to vector<2x32xf32>
    %153 = arith.addf %152, %151 : vector<2x32xf32>
    %154 = arith.divf %152, %153 : vector<2x32xf32>
    %155 = vector.extract_strided_slice %18 {offsets = [3, 0, 0], sizes = [1, 2, 32], strides = [1, 1, 1]} : vector<8x2x32xf32> to vector<1x2x32xf32>
    %156 = vector.shape_cast %155 : vector<1x2x32xf32> to vector<2x32xf32>
    %157 = vector.extract_strided_slice %136 {offsets = [0, 64], sizes = [2, 32], strides = [1, 1]} : vector<2x96xf32> to vector<2x32xf32>
    %158 = arith.addf %157, %22 : vector<2x32xf32>
    %159 = arith.mulf %145, %158 : vector<2x32xf32>
    %160 = arith.addf %156, %159 : vector<2x32xf32>
    %161 = math.tanh %160 : vector<2x32xf32>
    %162 = arith.subf %134, %161 : vector<2x32xf32>
    %163 = arith.mulf %154, %162 : vector<2x32xf32>
    %164 = arith.addf %161, %163 : vector<2x32xf32>
    %165 = vector.extract_strided_slice %25 {offsets = [3, 0, 0], sizes = [1, 2, 32], strides = [1, 1, 1]} : vector<8x2x32xf32> to vector<1x2x32xf32>
    %166 = vector.shape_cast %165 : vector<1x2x32xf32> to vector<2x32xf32>
    %167 = arith.mulf %166, %164 : vector<2x32xf32>
    %168 = arith.subf %164, %134 : vector<2x32xf32>
    %169 = arith.mulf %166, %168 : vector<2x32xf32>
    %170 = arith.addf %134, %169 : vector<2x32xf32>
    %171 = arith.truncf %170 : vector<2x32xf32> to vector<2x32xbf16>
    %cst_23 = arith.constant dense<0.000000e+00> : vector<2x96xf32>
    %172 = tpu.matmul %171, %19, %cst_23 {dimension_numbers = #tpu.dot_dimension_numbers<[1], [0], [0], [1], [0, 0, 1, 1], [], []>} : vector<2x32xbf16>, vector<32x96xbf16>, vector<2x96xf32> -> vector<2x96xf32>
    %173 = vector.extract_strided_slice %8 {offsets = [4, 0, 0], sizes = [1, 2, 32], strides = [1, 1, 1]} : vector<8x2x32xf32> to vector<1x2x32xf32>
    %174 = vector.shape_cast %173 : vector<1x2x32xf32> to vector<2x32xf32>
    %175 = vector.extract_strided_slice %172 {offsets = [0, 0], sizes = [2, 32], strides = [1, 1]} : vector<2x96xf32> to vector<2x32xf32>
    %176 = arith.addf %174, %175 : vector<2x32xf32>
    %177 = arith.negf %176 : vector<2x32xf32>
    %178 = math.exp %177 : vector<2x32xf32>
    %cst_24 = arith.constant 1.000000e+00 : f32
    %179 = vector.broadcast %cst_24 : f32 to vector<2x32xf32>
    %180 = arith.addf %179, %178 : vector<2x32xf32>
    %181 = arith.divf %179, %180 : vector<2x32xf32>
    %182 = vector.extract_strided_slice %13 {offsets = [4, 0, 0], sizes = [1, 2, 32], strides = [1, 1, 1]} : vector<8x2x32xf32> to vector<1x2x32xf32>
    %183 = vector.shape_cast %182 : vector<1x2x32xf32> to vector<2x32xf32>
    %184 = vector.extract_strided_slice %172 {offsets = [0, 32], sizes = [2, 32], strides = [1, 1]} : vector<2x96xf32> to vector<2x32xf32>
    %185 = arith.addf %183, %184 : vector<2x32xf32>
    %186 = arith.negf %185 : vector<2x32xf32>
    %187 = math.exp %186 : vector<2x32xf32>
    %cst_25 = arith.constant 1.000000e+00 : f32
    %188 = vector.broadcast %cst_25 : f32 to vector<2x32xf32>
    %189 = arith.addf %188, %187 : vector<2x32xf32>
    %190 = arith.divf %188, %189 : vector<2x32xf32>
    %191 = vector.extract_strided_slice %18 {offsets = [4, 0, 0], sizes = [1, 2, 32], strides = [1, 1, 1]} : vector<8x2x32xf32> to vector<1x2x32xf32>
    %192 = vector.shape_cast %191 : vector<1x2x32xf32> to vector<2x32xf32>
    %193 = vector.extract_strided_slice %172 {offsets = [0, 64], sizes = [2, 32], strides = [1, 1]} : vector<2x96xf32> to vector<2x32xf32>
    %194 = arith.addf %193, %22 : vector<2x32xf32>
    %195 = arith.mulf %181, %194 : vector<2x32xf32>
    %196 = arith.addf %192, %195 : vector<2x32xf32>
    %197 = math.tanh %196 : vector<2x32xf32>
    %198 = arith.subf %170, %197 : vector<2x32xf32>
    %199 = arith.mulf %190, %198 : vector<2x32xf32>
    %200 = arith.addf %197, %199 : vector<2x32xf32>
    %201 = vector.extract_strided_slice %25 {offsets = [4, 0, 0], sizes = [1, 2, 32], strides = [1, 1, 1]} : vector<8x2x32xf32> to vector<1x2x32xf32>
    %202 = vector.shape_cast %201 : vector<1x2x32xf32> to vector<2x32xf32>
    %203 = arith.mulf %202, %200 : vector<2x32xf32>
    %204 = arith.subf %200, %170 : vector<2x32xf32>
    %205 = arith.mulf %202, %204 : vector<2x32xf32>
    %206 = arith.addf %170, %205 : vector<2x32xf32>
    %207 = arith.truncf %206 : vector<2x32xf32> to vector<2x32xbf16>
    %cst_26 = arith.constant dense<0.000000e+00> : vector<2x96xf32>
    %208 = tpu.matmul %207, %19, %cst_26 {dimension_numbers = #tpu.dot_dimension_numbers<[1], [0], [0], [1], [0, 0, 1, 1], [], []>} : vector<2x32xbf16>, vector<32x96xbf16>, vector<2x96xf32> -> vector<2x96xf32>
    %209 = vector.extract_strided_slice %8 {offsets = [5, 0, 0], sizes = [1, 2, 32], strides = [1, 1, 1]} : vector<8x2x32xf32> to vector<1x2x32xf32>
    %210 = vector.shape_cast %209 : vector<1x2x32xf32> to vector<2x32xf32>
    %211 = vector.extract_strided_slice %208 {offsets = [0, 0], sizes = [2, 32], strides = [1, 1]} : vector<2x96xf32> to vector<2x32xf32>
    %212 = arith.addf %210, %211 : vector<2x32xf32>
    %213 = arith.negf %212 : vector<2x32xf32>
    %214 = math.exp %213 : vector<2x32xf32>
    %cst_27 = arith.constant 1.000000e+00 : f32
    %215 = vector.broadcast %cst_27 : f32 to vector<2x32xf32>
    %216 = arith.addf %215, %214 : vector<2x32xf32>
    %217 = arith.divf %215, %216 : vector<2x32xf32>
    %218 = vector.extract_strided_slice %13 {offsets = [5, 0, 0], sizes = [1, 2, 32], strides = [1, 1, 1]} : vector<8x2x32xf32> to vector<1x2x32xf32>
    %219 = vector.shape_cast %218 : vector<1x2x32xf32> to vector<2x32xf32>
    %220 = vector.extract_strided_slice %208 {offsets = [0, 32], sizes = [2, 32], strides = [1, 1]} : vector<2x96xf32> to vector<2x32xf32>
    %221 = arith.addf %219, %220 : vector<2x32xf32>
    %222 = arith.negf %221 : vector<2x32xf32>
    %223 = math.exp %222 : vector<2x32xf32>
    %cst_28 = arith.constant 1.000000e+00 : f32
    %224 = vector.broadcast %cst_28 : f32 to vector<2x32xf32>
    %225 = arith.addf %224, %223 : vector<2x32xf32>
    %226 = arith.divf %224, %225 : vector<2x32xf32>
    %227 = vector.extract_strided_slice %18 {offsets = [5, 0, 0], sizes = [1, 2, 32], strides = [1, 1, 1]} : vector<8x2x32xf32> to vector<1x2x32xf32>
    %228 = vector.shape_cast %227 : vector<1x2x32xf32> to vector<2x32xf32>
    %229 = vector.extract_strided_slice %208 {offsets = [0, 64], sizes = [2, 32], strides = [1, 1]} : vector<2x96xf32> to vector<2x32xf32>
    %230 = arith.addf %229, %22 : vector<2x32xf32>
    %231 = arith.mulf %217, %230 : vector<2x32xf32>
    %232 = arith.addf %228, %231 : vector<2x32xf32>
    %233 = math.tanh %232 : vector<2x32xf32>
    %234 = arith.subf %206, %233 : vector<2x32xf32>
    %235 = arith.mulf %226, %234 : vector<2x32xf32>
    %236 = arith.addf %233, %235 : vector<2x32xf32>
    %237 = vector.extract_strided_slice %25 {offsets = [5, 0, 0], sizes = [1, 2, 32], strides = [1, 1, 1]} : vector<8x2x32xf32> to vector<1x2x32xf32>
    %238 = vector.shape_cast %237 : vector<1x2x32xf32> to vector<2x32xf32>
    %239 = arith.mulf %238, %236 : vector<2x32xf32>
    %240 = arith.subf %236, %206 : vector<2x32xf32>
    %241 = arith.mulf %238, %240 : vector<2x32xf32>
    %242 = arith.addf %206, %241 : vector<2x32xf32>
    %243 = arith.truncf %242 : vector<2x32xf32> to vector<2x32xbf16>
    %cst_29 = arith.constant dense<0.000000e+00> : vector<2x96xf32>
    %244 = tpu.matmul %243, %19, %cst_29 {dimension_numbers = #tpu.dot_dimension_numbers<[1], [0], [0], [1], [0, 0, 1, 1], [], []>} : vector<2x32xbf16>, vector<32x96xbf16>, vector<2x96xf32> -> vector<2x96xf32>
    %245 = vector.extract_strided_slice %8 {offsets = [6, 0, 0], sizes = [1, 2, 32], strides = [1, 1, 1]} : vector<8x2x32xf32> to vector<1x2x32xf32>
    %246 = vector.shape_cast %245 : vector<1x2x32xf32> to vector<2x32xf32>
    %247 = vector.extract_strided_slice %244 {offsets = [0, 0], sizes = [2, 32], strides = [1, 1]} : vector<2x96xf32> to vector<2x32xf32>
    %248 = arith.addf %246, %247 : vector<2x32xf32>
    %249 = arith.negf %248 : vector<2x32xf32>
    %250 = math.exp %249 : vector<2x32xf32>
    %cst_30 = arith.constant 1.000000e+00 : f32
    %251 = vector.broadcast %cst_30 : f32 to vector<2x32xf32>
    %252 = arith.addf %251, %250 : vector<2x32xf32>
    %253 = arith.divf %251, %252 : vector<2x32xf32>
    %254 = vector.extract_strided_slice %13 {offsets = [6, 0, 0], sizes = [1, 2, 32], strides = [1, 1, 1]} : vector<8x2x32xf32> to vector<1x2x32xf32>
    %255 = vector.shape_cast %254 : vector<1x2x32xf32> to vector<2x32xf32>
    %256 = vector.extract_strided_slice %244 {offsets = [0, 32], sizes = [2, 32], strides = [1, 1]} : vector<2x96xf32> to vector<2x32xf32>
    %257 = arith.addf %255, %256 : vector<2x32xf32>
    %258 = arith.negf %257 : vector<2x32xf32>
    %259 = math.exp %258 : vector<2x32xf32>
    %cst_31 = arith.constant 1.000000e+00 : f32
    %260 = vector.broadcast %cst_31 : f32 to vector<2x32xf32>
    %261 = arith.addf %260, %259 : vector<2x32xf32>
    %262 = arith.divf %260, %261 : vector<2x32xf32>
    %263 = vector.extract_strided_slice %18 {offsets = [6, 0, 0], sizes = [1, 2, 32], strides = [1, 1, 1]} : vector<8x2x32xf32> to vector<1x2x32xf32>
    %264 = vector.shape_cast %263 : vector<1x2x32xf32> to vector<2x32xf32>
    %265 = vector.extract_strided_slice %244 {offsets = [0, 64], sizes = [2, 32], strides = [1, 1]} : vector<2x96xf32> to vector<2x32xf32>
    %266 = arith.addf %265, %22 : vector<2x32xf32>
    %267 = arith.mulf %253, %266 : vector<2x32xf32>
    %268 = arith.addf %264, %267 : vector<2x32xf32>
    %269 = math.tanh %268 : vector<2x32xf32>
    %270 = arith.subf %242, %269 : vector<2x32xf32>
    %271 = arith.mulf %262, %270 : vector<2x32xf32>
    %272 = arith.addf %269, %271 : vector<2x32xf32>
    %273 = vector.extract_strided_slice %25 {offsets = [6, 0, 0], sizes = [1, 2, 32], strides = [1, 1, 1]} : vector<8x2x32xf32> to vector<1x2x32xf32>
    %274 = vector.shape_cast %273 : vector<1x2x32xf32> to vector<2x32xf32>
    %275 = arith.mulf %274, %272 : vector<2x32xf32>
    %276 = arith.subf %272, %242 : vector<2x32xf32>
    %277 = arith.mulf %274, %276 : vector<2x32xf32>
    %278 = arith.addf %242, %277 : vector<2x32xf32>
    %279 = arith.truncf %278 : vector<2x32xf32> to vector<2x32xbf16>
    %cst_32 = arith.constant dense<0.000000e+00> : vector<2x96xf32>
    %280 = tpu.matmul %279, %19, %cst_32 {dimension_numbers = #tpu.dot_dimension_numbers<[1], [0], [0], [1], [0, 0, 1, 1], [], []>} : vector<2x32xbf16>, vector<32x96xbf16>, vector<2x96xf32> -> vector<2x96xf32>
    %281 = vector.extract_strided_slice %8 {offsets = [7, 0, 0], sizes = [1, 2, 32], strides = [1, 1, 1]} : vector<8x2x32xf32> to vector<1x2x32xf32>
    %282 = vector.shape_cast %281 : vector<1x2x32xf32> to vector<2x32xf32>
    %283 = vector.extract_strided_slice %280 {offsets = [0, 0], sizes = [2, 32], strides = [1, 1]} : vector<2x96xf32> to vector<2x32xf32>
    %284 = arith.addf %282, %283 : vector<2x32xf32>
    %285 = arith.negf %284 : vector<2x32xf32>
    %286 = math.exp %285 : vector<2x32xf32>
    %cst_33 = arith.constant 1.000000e+00 : f32
    %287 = vector.broadcast %cst_33 : f32 to vector<2x32xf32>
    %288 = arith.addf %287, %286 : vector<2x32xf32>
    %289 = arith.divf %287, %288 : vector<2x32xf32>
    %290 = vector.extract_strided_slice %13 {offsets = [7, 0, 0], sizes = [1, 2, 32], strides = [1, 1, 1]} : vector<8x2x32xf32> to vector<1x2x32xf32>
    %291 = vector.shape_cast %290 : vector<1x2x32xf32> to vector<2x32xf32>
    %292 = vector.extract_strided_slice %280 {offsets = [0, 32], sizes = [2, 32], strides = [1, 1]} : vector<2x96xf32> to vector<2x32xf32>
    %293 = arith.addf %291, %292 : vector<2x32xf32>
    %294 = arith.negf %293 : vector<2x32xf32>
    %295 = math.exp %294 : vector<2x32xf32>
    %cst_34 = arith.constant 1.000000e+00 : f32
    %296 = vector.broadcast %cst_34 : f32 to vector<2x32xf32>
    %297 = arith.addf %296, %295 : vector<2x32xf32>
    %298 = arith.divf %296, %297 : vector<2x32xf32>
    %299 = vector.extract_strided_slice %18 {offsets = [7, 0, 0], sizes = [1, 2, 32], strides = [1, 1, 1]} : vector<8x2x32xf32> to vector<1x2x32xf32>
    %300 = vector.shape_cast %299 : vector<1x2x32xf32> to vector<2x32xf32>
    %301 = vector.extract_strided_slice %280 {offsets = [0, 64], sizes = [2, 32], strides = [1, 1]} : vector<2x96xf32> to vector<2x32xf32>
    %302 = arith.addf %301, %22 : vector<2x32xf32>
    %303 = arith.mulf %289, %302 : vector<2x32xf32>
    %304 = arith.addf %300, %303 : vector<2x32xf32>
    %305 = math.tanh %304 : vector<2x32xf32>
    %306 = arith.subf %278, %305 : vector<2x32xf32>
    %307 = arith.mulf %298, %306 : vector<2x32xf32>
    %308 = arith.addf %305, %307 : vector<2x32xf32>
    %309 = vector.extract_strided_slice %25 {offsets = [7, 0, 0], sizes = [1, 2, 32], strides = [1, 1, 1]} : vector<8x2x32xf32> to vector<1x2x32xf32>
    %310 = vector.shape_cast %309 : vector<1x2x32xf32> to vector<2x32xf32>
    %311 = arith.mulf %310, %308 : vector<2x32xf32>
    %312 = arith.subf %308, %278 : vector<2x32xf32>
    %313 = arith.mulf %310, %312 : vector<2x32xf32>
    %314 = arith.addf %278, %313 : vector<2x32xf32>
    %315 = vector.shape_cast %59 : vector<2x32xf32> to vector<1x2x32xf32>
    %316 = vector.shape_cast %95 : vector<2x32xf32> to vector<1x2x32xf32>
    %317 = vector.shape_cast %131 : vector<2x32xf32> to vector<1x2x32xf32>
    %318 = vector.shape_cast %167 : vector<2x32xf32> to vector<1x2x32xf32>
    %319 = vector.shape_cast %203 : vector<2x32xf32> to vector<1x2x32xf32>
    %320 = vector.shape_cast %239 : vector<2x32xf32> to vector<1x2x32xf32>
    %321 = vector.shape_cast %275 : vector<2x32xf32> to vector<1x2x32xf32>
    %322 = vector.shape_cast %311 : vector<2x32xf32> to vector<1x2x32xf32>
    %323 = tpu.concatenate %315, %316, %317, %318, %319, %320, %321, %322 in 0 : vector<1x2x32xf32>, vector<1x2x32xf32>, vector<1x2x32xf32>, vector<1x2x32xf32>, vector<1x2x32xf32>, vector<1x2x32xf32>, vector<1x2x32xf32>, vector<1x2x32xf32> -> vector<8x2x32xf32>
    %c0_35 = arith.constant 0 : index
    %c0_36 = arith.constant 0 : index
    %c0_37 = arith.constant 0 : index
    %324 = vector.load %arg9[%c0_35, %c0_36, %c0_37] : memref<8x2x32xf32, #tpu.memory_space<vmem>>, vector<8x2x32xf32>
    tpu.vector_store %arg9[%c0_35, %c0_36, %c0_37], %323 {strides = array<i32>} : memref<8x2x32xf32, #tpu.memory_space<vmem>>, vector<8x2x32xf32>,
    %c0_38 = arith.constant 0 : index
    %c0_39 = arith.constant 0 : index
    %325 = vector.load %arg6[%c0_38, %c0_39] : memref<2x20xf32, #tpu.memory_space<vmem>>, vector<2x20xf32>
    %326 = vector.extract_strided_slice %325 {offsets = [0, 0], sizes = [2, 16], strides = [1, 1]} : vector<2x20xf32> to vector<2x16xf32>
    %327 = vector.extract_strided_slice %325 {offsets = [0, 16], sizes = [2, 4], strides = [1, 1]} : vector<2x20xf32> to vector<2x4xf32>
    %328 = arith.truncf %327 : vector<2x4xf32> to vector<2x4xbf16>
    %c0_40 = arith.constant 0 : index
    %c0_41 = arith.constant 0 : index
    %329 = vector.load %arg7[%c0_40, %c0_41] : memref<4x16xbf16, #tpu.memory_space<vmem>>, vector<4x16xbf16>
    %cst_42 = arith.constant dense<0.000000e+00> : vector<2x16xf32>
    %330 = tpu.matmul %328, %329, %cst_42 {dimension_numbers = #tpu.dot_dimension_numbers<[1], [0], [0], [1], [0, 0, 1, 1], [], []>} : vector<2x4xbf16>, vector<4x16xbf16>, vector<2x16xf32> -> vector<2x16xf32>
    %331 = vector.extract_strided_slice %0 {offsets = [5, 0], sizes = [1, 16], strides = [1, 1]} : vector<6x32xf32> to vector<1x16xf32>
    %332 = vector.broadcast %331 : vector<1x16xf32> to vector<2x16xf32>
    %333 = arith.addf %330, %332 : vector<2x16xf32>
    %334 = math.tanh %333 : vector<2x16xf32>
    %335 = arith.addf %326, %334 : vector<2x16xf32>
    %c0_43 = arith.constant 0 : index
    %c0_44 = arith.constant 0 : index
    %336 = vector.load %arg8[%c0_43, %c0_44] : memref<48x32xbf16, #tpu.memory_space<vmem>>, vector<48x32xbf16>
    %337 = arith.truncf %335 : vector<2x16xf32> to vector<2x16xbf16>
    %338 = vector.extract_strided_slice %336 {offsets = [0, 0], sizes = [16, 32], strides = [1, 1]} : vector<48x32xbf16> to vector<16x32xbf16>
    %cst_45 = arith.constant dense<0.000000e+00> : vector<2x32xf32>
    %339 = tpu.matmul %337, %338, %cst_45 {dimension_numbers = #tpu.dot_dimension_numbers<[1], [0], [0], [1], [0, 0, 1, 1], [], []>} : vector<2x16xbf16>, vector<16x32xbf16>, vector<2x32xf32> -> vector<2x32xf32>
    %340 = arith.truncf %314 : vector<2x32xf32> to vector<2x32xbf16>
    %341 = vector.extract_strided_slice %336 {offsets = [16, 0], sizes = [32, 32], strides = [1, 1]} : vector<48x32xbf16> to vector<32x32xbf16>
    %cst_46 = arith.constant dense<0.000000e+00> : vector<2x32xf32>
    %342 = tpu.matmul %340, %341, %cst_46 {dimension_numbers = #tpu.dot_dimension_numbers<[1], [0], [0], [1], [0, 0, 1, 1], [], []>} : vector<2x32xbf16>, vector<32x32xbf16>, vector<2x32xf32> -> vector<2x32xf32>
    %343 = arith.addf %339, %342 : vector<2x32xf32>
    %344 = vector.extract_strided_slice %0 {offsets = [4, 0], sizes = [1, 32], strides = [1, 1]} : vector<6x32xf32> to vector<1x32xf32>
    %345 = vector.broadcast %344 : vector<1x32xf32> to vector<2x32xf32>
    %346 = arith.addf %343, %345 : vector<2x32xf32>
    %347 = math.tanh %346 : vector<2x32xf32>
    %c0_47 = arith.constant 0 : index
    %c0_48 = arith.constant 0 : index
    %348 = vector.load %arg10[%c0_47, %c0_48] : memref<2x32xf32, #tpu.memory_space<vmem>>, vector<2x32xf32>
    tpu.vector_store %arg10[%c0_47, %c0_48], %347 {strides = array<i32>} : memref<2x32xf32, #tpu.memory_space<vmem>>, vector<2x32xf32>,
    return
  }
  func.func @transform_0(%arg0: i32) -> (i32, i32) {
    %c0_i32 = arith.constant 0 : i32
    %c0_i32_0 = arith.constant 0 : i32
    %c0_i32_1 = arith.constant 0 : i32
    return %c0_i32, %c0_i32_0 : i32, i32
  }
  func.func @transform_1(%arg0: i32) -> (i32, i32, i32) {
    %c0_i32 = arith.constant 0 : i32
    %c0_i32_0 = arith.constant 0 : i32
    %c0_i32_1 = arith.constant 0 : i32
    %c0_i32_2 = arith.constant 0 : i32
    return %c0_i32, %c0_i32_0, %c0_i32_1 : i32, i32, i32
  }
  func.func @transform_2(%arg0: i32) -> (i32, i32) {
    %c0_i32 = arith.constant 0 : i32
    %c0_i32_0 = arith.constant 0 : i32
    %c0_i32_1 = arith.constant 0 : i32
    return %c0_i32, %c0_i32_0 : i32, i32
  }
  func.func @transform_3(%arg0: i32) -> (i32, i32) {
    %c0_i32 = arith.constant 0 : i32
    %c0_i32_0 = arith.constant 0 : i32
    %c0_i32_1 = arith.constant 0 : i32
    return %c0_i32, %c0_i32_0 : i32, i32
  }
  func.func @transform_4(%arg0: i32) -> (i32, i32) {
    %c0_i32 = arith.constant 0 : i32
    %c0_i32_0 = arith.constant 0 : i32
    %c0_i32_1 = arith.constant 0 : i32
    return %c0_i32, %c0_i32_0 : i32, i32
  }
  func.func @transform_5(%arg0: i32) -> (i32, i32) {
    %c0_i32 = arith.constant 0 : i32
    %c0_i32_0 = arith.constant 0 : i32
    %c0_i32_1 = arith.constant 0 : i32
    return %c0_i32, %c0_i32_0 : i32, i32
  }
  func.func @transform_6(%arg0: i32) -> (i32, i32) {
    %c0_i32 = arith.constant 0 : i32
    %c0_i32_0 = arith.constant 0 : i32
    %c0_i32_1 = arith.constant 0 : i32
    return %c0_i32, %c0_i32_0 : i32, i32
  }
  func.func @transform_7(%arg0: i32) -> (i32, i32) {
    %c0_i32 = arith.constant 0 : i32
    %c0_i32_0 = arith.constant 0 : i32
    %c0_i32_1 = arith.constant 0 : i32
    return %c0_i32, %c0_i32_0 : i32, i32
  }
  func.func @transform_8(%arg0: i32) -> (i32, i32, i32) {
    %c0_i32 = arith.constant 0 : i32
    %c0_i32_0 = arith.constant 0 : i32
    %c0_i32_1 = arith.constant 0 : i32
    %c0_i32_2 = arith.constant 0 : i32
    return %c0_i32, %c0_i32_0, %c0_i32_1 : i32, i32, i32
  }
  func.func @transform_9(%arg0: i32) -> (i32, i32) {
    %c0_i32 = arith.constant 0 : i32
    %c0_i32_0 = arith.constant 0 : i32
    %c0_i32_1 = arith.constant 0 : i32
    return %c0_i32, %c0_i32_0 : i32, i32
  }
}

</mosaic_0001>

<bundles_post_ra>
// kernel: tpu_custom_call.1
= control target key start
LH: loop header
LB: loop body
LE: loop exit
PB: predicated region body
PF: predicated region fallthrough
CT: control target
= control target key end

     0   :  { %15 = vsyncpa [#allocation3], 0  ;;  %v98_v1 = vlaneseq  ;;  %v1955_v2 = vmov 0.0   ;;  %vm53_vm0 = vcmask 1045504   ;;  %vm1956_vm1 = vmmov 0   ;;  %s2476_s0 = inlined_call_operand.vmem [shape: bf16[16,12], index: 0, kind: input, shape index: {}]   ;;  %s2477_s1 = inlined_call_operand.vmem [shape: f32[8,2,1], index: 1, kind: input, shape index: {}]   ;;  %s2478_s2 = inlined_call_operand.vmem [shape: bf16[12,96], index: 2, kind: input, shape index: {}]   ;;  %s2479_s3 = inlined_call_operand.vmem [shape: bf16[32,96], index: 3, kind: input, shape index: {}]   ;;  %s2480_s4 = inlined_call_operand.vmem [shape: f32[6,32], index: 4, kind: input, shape index: {}]   ;;  %s2481_s5 = inlined_call_operand.vmem [shape: f32[2,20], index: 5, kind: input, shape index: {}]   ;;  %s2482_s6 = inlined_call_operand.vmem [shape: bf16[4,16], index: 6, kind: input, shape index: {}]   ;;  %s2483_s7 = inlined_call_operand.vmem [shape: bf16[48,32], index: 7, kind: input, shape index: {}]   ;;  %s2484_s8 = inlined_call_operand.hbm [shape: f32[8,2,32], index: 8, kind: output, shape index: {0}]   ;;  %s2485_s9 = inlined_call_operand.hbm [shape: f32[2,32], index: 9, kind: output, shape index: {1}]  }
   0x1   :  { %v2019_v0 = vld [vmem:[%s2479_s3 + $0x8] sm:$0xff]   ;;  %1722 = vmatprep.subr.bf16.mxu1 %v1955_v2  ;;  %1716 = vmatprep.subr.bf16.mxu0 %v1955_v2  ;;  %v1820_v3 = vld [vmem:[%s2478_s2] sm:$0x3f]   ;;  %vm49_vm2 = vcmask 97280   ;;  %v1957_v9 = vmov 0  }
   0x2   :  { %1723 = vmatpush3.bf16.msra.mxu1 %v2019_v0  ;;  %v55_v4 = vsel %vm53_vm0, %v1820_v3, 0  ;;  %1718 = vmatprep.mubr.msk.bf16.mxu0 %vm1956_vm1, %v1955_v2  ;;  %v1821_v5 = vld [vmem:[%s2476_s0] sm:$0xff]   ;;  %v2040_v7 = vshrl.u32 %v98_v1, 7 }
   0x3   :  { %1724 = vmatprep.subr.bf16.mxu1 %v1955_v2  ;;  %v2036_v6 = vld [vmem:[%s2479_s3] sm:$0xff]   ;;  %1717 = vmatpush3.bf16.msra.mxu0 %v55_v4 }
   0x4   :  { %1726 = vmatprep.mubr.msk.bf16.mxu1 %vm1956_vm1, %v1955_v2  ;;  %v34_v8 = vld [vmem:[%s2480_s4] sm:$0x3f]  ;;  %1817 = vset.pattern.permute.xlu1 %v1957_v9  ;;  %v262_v10 = vsub.s32 3, %v2040_v7  ;;  %v204_v11 = vsub.s32 2, %v2040_v7 }
   0x5   :  { %1730 = vmatprep.subr.bf16.mxu0 %v1955_v2  ;;  %1818 = vset.pattern.permute.xlu0 %v1957_v9 }
   0x6   :  { %1725 = vmatpush3.bf16.msra.mxu1 %v2036_v6  ;;  %1719 = vmatmul.mubr.msk.bf16.vlgmr.msra.gmra.mxu0 %vm49_vm2, %v1821_v5  ;;  %v263_v12 = vrot.slane %v34_v8, %v262_v10  ;;  %v205_v13 = vrot.slane %v34_v8, %v204_v11 }
   0x7   :  { %1738 = vmatprep.subr.bf16.mxu1 %v1955_v2  ;;  %1731 = vmatpush3.bf16.msra.mxu0 %v2019_v0 }
   0x8   :  { %1734 = vmatprep.mubr.msk.bf16.mxu0 %vm1956_vm1, %v1955_v2 }
   0x9   :  { %16 = vsyncpa [#allocation5], 0  ;;  %1727 = vmatmul.mubr.bf16.vlgmr.msra.gmra.mxu1 %v1957_v9  ;;  %1732 = vmatprep.subr.bf16.mxu0 %v1955_v2  ;;  %s1958_s0 = smov 64   ;;  %v1959_v14 = vmov 1983009808   ;;  %v150_v23 = vsub.s32 1, %v2040_v7 }
   0xa   :  { %343 = vrot.lane.b32.xlu0 %v263_v12, %s1958_s0  ;;  %207 = vrot.lane.b32.xlu1 %v205_v13, %s1958_s0  ;;  %v108_v15 = vunpack.c.l.s4 %v1959_v14  ;;  %s1960_s3 = smov 32   ;;  %v100_v31 = vsub.s32 0, %v2040_v7  ;;  %s1961_s18 = smov 96   ;;  %v264_v49 = vld [vmem:[%s2477_s1] sm:$0x3]  ;;  %vm1430_vm3 = vcmask 254976  }
   0xb   :  { %1739 = vmatpush3.bf16.msra.mxu1 %v2019_v0  ;;  %1742 = vmatprep.mubr.msk.bf16.mxu1 %vm1956_vm1, %v1955_v2  ;;  %v151_v29 = vrot.slane %v34_v8, %v150_v23  ;;  %vm284_vm4 = vcmask 261120   ;;  %s1962_s14 = smov 112   ;;  %vm1453_vm5 = vcmask 1041408   ;;  %vm1449_vm6 = vcmask 31744  }
   0xc   :  { %1733 = vmatpush3.bf16.msra.mxu0 %v2036_v6  ;;  %1740 = vmatprep.subr.bf16.mxu1 %v1955_v2  ;;  %v109_v16 = vunpack.c.0.s8 %v108_v15  ;;  %v2077_v32 = vrot.slane %v34_v8, %v100_v31  ;;  %vm1568_vm7 = vcmask 130048  }
   0xd   :  { %1746 = vmatprep.subr.bf16.mxu0 %v1955_v2 }
   0xe   :  { %v2067_v21 = vsub.s32 %v109_v16, %v2040_v7 }
   0xf   :  { %1741 = vmatpush3.bf16.msra.mxu1 %v2036_v6 }
  0x10   :  { %1754 = vmatprep.subr.bf16.mxu1 %v1955_v2 }
  0x7c   :  { %v2064_v18 = vpop.permute.xlu0 %343  ;;  %v2085_v42 = vpop.permute.xlu1 %207 }
  0xc6   :  { %v91_v17 = vpop.f32.mrf.mxu0 }
  0xc7   :  { %v2080_v33 = vadd.f32 %v2077_v32, %v91_v17  ;;  %v2088_v43 = vadd.f32 %v2085_v42, %v91_v17 }
  0xc8   :  { %v1720_v20 = vpop.f32.mrf.mxu0 }
  0xc9   :  { %v322_v19 = vpop.f32.mrf.mxu1  ;;  %v113_v34 = vrot.slane %v2080_v33, %v2067_v21  ;;  %v2092_v44 = vrot.slane %v2088_v43, %v2067_v21 }
  0xca   :  { %v346_v22 = vadd.f32 %v2064_v18, %v322_v19  ;;  %v2071_v25 = vpop.f32.mrf.mxu0 }
  0xcb   :  { %v1728_v24 = vpop.f32.mrf.mxu1  ;;  %v328_v35 = vadd.f32 %v322_v19, %v113_v34  ;;  %v121_v5 = vcombine.high %v113_v34, %v113_v34 }
  0xcc   :  { %v354_v26 = vrot.slane %v346_v22, %v2067_v21  ;;  %v1721_v28 = vpop.f32.mrf.mxu0 }
  0xcd   :  { %v325_v27 = vpop.f32.mrf.mxu1  ;;  %v1654_v36 = vmul.f32 -1.442695, %v328_v35 }
  0xce   :  { %355 = vrot.lane.b32.xlu0 %v354_v26, %s1958_s0  ;;  %v229_v26 = vcombine.high %v2092_v44, %v2092_v44 }
  0xcf   :  { %v1729_v30 = vpop.f32.mrf.mxu1  ;;  %1826 = vpow2.f32 %v1654_v36 }
  0xd2   :  { %153 = vrot.lane.b32.xlu0 %v151_v29, %s1960_s3 }
  0xdc   :  { %v1827_v37 = vpop.eup %1826 }
  0xdd   :  { %v332_v38 = vadd.f32 1.0, %v1827_v37 }
  0xdf   :  { %1828 = vrcp.f32 %v332_v38 }
  0xec   :  { %v1829_v39 = vpop.eup %1828 }
 0x140   :  { %v356_v40 = vpop.permute.xlu0 %355 }
 0x141   :  { %v358_v41 = vmul.f32 %v1829_v39, %v356_v40 }
 0x143   :  { %360 = vrot.lane.b32.xlu1 %v358_v41, %s1958_s0 }
 0x144   :  { %v2098_v50 = vpop.permute.xlu0 %153 }
 0x145   :  { %v2101_v51 = vadd.f32 %v2098_v50, %v91_v17 }
 0x147   :  { %v167_v52 = vrot.slane %v2101_v51, %v2067_v21 }
 0x149   :  { %v335_v53 = vadd.f32 %v322_v19, %v167_v52  ;;  %v175_v8 = vcombine.high %v167_v52, %v167_v52 }
 0x14b   :  { %v1655_v54 = vmul.f32 -1.442695, %v335_v53 }
 0x1b5   :  { %v361_v45 = vpop.permute.xlu1 %360 }
 0x1b6   :  { %v363_v46 = vadd.f32 %v361_v45, %v2092_v44  ;;  %v265_v45 = vld [vmem:[%s2477_s1 + $0x2] sm:$0x3] }
 0x1b8   :  { %1830 = vtanh.f32 %v363_v46 }
 0x1b9   :  { %1832 = vpow2.f32 %v1655_v54 }
 0x1c5   :  { %v1831_v47 = vpop.eup %1830 }
 0x1c6   :  { %v365_v48 = vsub.f32 0.0, %v1831_v47  ;;  %v1833_v55 = vpop.eup %1832 }
 0x1c7   :  { %v339_v56 = vadd.f32 1.0, %v1833_v55 }
 0x1c8   :  { %367 = vrot.lane.b32.xlu1 %v365_v48, %s1961_s18 }
 0x1c9   :  { %1834 = vrcp.f32 %v339_v56 }
 0x1cc   :  { %378 = vperm.xlu1 %1817, %v264_v49  }
 0x1d6   :  { %v1835_v57 = vpop.eup %1834 }
 0x23a   :  { %v368_v58 = vpop.permute.xlu1 %367 }
 0x23b   :  { %v370_v59 = vmul.f32 %v1835_v57, %v368_v58 }
 0x23d   :  { %372 = vrot.lane.b32.xlu0 %v370_v59, %s1960_s3 }
 0x247   :  { %v379_v63 = vpop.permute.xlu1 %378 }
 0x2af   :  { %v373_v60 = vpop.permute.xlu0 %372 }
 0x2b0   :  { %v375_v61 = vadd.f32 %v1831_v47, %v373_v60 }
 0x2b2   :  { %v388_v62 = vrot.slane %v375_v61, %v2067_v21 }
 0x2b4   :  { %389 = vrot.lane.b32.xlu0 %v388_v62, %s1958_s0 }
 0x326   :  { %v390_v1 = vpop.permute.xlu0 %389 }
 0x327   :  { %v2108_v3 = vmul.f32 %v390_v1, %v379_v63  ;;  %v106_v1 = vcombine.high %v2080_v33, %v2080_v33 }
 0x329   :  { %1431 = vst.msk [vmem:[#allocation2] sm:$0x3] %vm1430_vm3, %v2108_v3  ;;  %v394_v4 = vpack.c.bf16 %v2108_v3, %v2108_v3  ;;  %v524_v36 = vrot.slane %v2108_v3, %v2067_v21 }
 0x32b   :  { %1735 = vmatmul.mubr.msk.bf16.vlgmr.msra.gmra.mxu0 %vm284_vm4, %v394_v4 }
 0x32c   :  { %1747 = vmatpush3.bf16.msra.mxu0 %v2019_v0  ;;  %1750 = vmatprep.mubr.msk.bf16.mxu0 %vm1956_vm1, %v1955_v2 }
 0x32d   :  { %1748 = vmatprep.subr.bf16.mxu0 %v1955_v2 }
 0x330   :  { %1749 = vmatpush3.bf16.msra.mxu0 %v2036_v6 }
 0x331   :  { %1762 = vmatprep.subr.bf16.mxu0 %v1955_v2 }
 0x3eb   :  { %v432_v9 = vpop.f32.mrf.mxu0 }
 0x3ec   :  { %v438_v10 = vadd.f32 %v432_v9, %v121_v5  ;;  %v445_v11 = vadd.f32 %v432_v9, %v175_v8  ;;  %v452_v12 = vadd.f32 %v432_v9, %v2064_v18 }
 0x3ed   :  { %v1736_v13 = vpop.f32.mrf.mxu0 }
 0x3ee   :  { %v460_v14 = vrot.slane %v452_v12, %v2067_v21  ;;  %v1657_v17 = vmul.f32 -1.442695, %v438_v10  ;;  %v1658_v37 = vmul.f32 -1.442695, %v445_v11  ;;  %v214_v13 = vcombine.high %v2088_v43, %v2088_v43 }
 0x3ef   :  { %v435_v15 = vpop.f32.mrf.mxu0 }
 0x3f0   :  { %461 = vrot.lane.b32.xlu1 %v460_v14, %s1958_s0  ;;  %1836 = vpow2.f32 %v1657_v17  ;;  %v2172_v33 = vrot.slane %v214_v13, %v2067_v21 }
 0x3f1   :  { %v1737_v16 = vpop.f32.mrf.mxu0 }
 0x3fd   :  { %v1837_v19 = vpop.eup %1836 }
 0x3fe   :  { %v442_v20 = vadd.f32 1.0, %v1837_v19 }
 0x400   :  { %1838 = vrcp.f32 %v442_v20 }
 0x40d   :  { %v1839_v22 = vpop.eup %1838 }
 0x462   :  { %v462_v23 = vpop.permute.xlu1 %461 }
 0x463   :  { %v464_v24 = vmul.f32 %v1839_v22, %v462_v23  ;;  %v160_v23 = vcombine.high %v2101_v51, %v2101_v51 }
 0x465   :  { %466 = vrot.lane.b32.xlu0 %v464_v24, %s1958_s0  ;;  %v2186_v24 = vrot.slane %v160_v23, %v2067_v21 }
 0x4d7   :  { %v467_v27 = vpop.permute.xlu0 %466 }
 0x4d8   :  { %v469_v28 = vadd.f32 %v467_v27, %v229_v26 }
 0x4da   :  { %1840 = vtanh.f32 %v469_v28 }
 0x4db   :  { %1842 = vpow2.f32 %v1658_v37 }
 0x4e7   :  { %v1841_v29 = vpop.eup %1840 }
 0x4e8   :  { %v478_v30 = vrot.slane %v1841_v29, %v2067_v21  ;;  %v1843_v38 = vpop.eup %1842 }
 0x4e9   :  { %v449_v39 = vadd.f32 1.0, %v1843_v38 }
 0x4ea   :  { %479 = vrot.lane.b32.xlu1 %v478_v30, %s1958_s0 }
 0x4eb   :  { %1844 = vrcp.f32 %v449_v39 }
 0x4f8   :  { %v1845_v40 = vpop.eup %1844 }
 0x55c   :  { %v480_v31 = vpop.permute.xlu1 %479 }
 0x55d   :  { %v482_v34 = vsub.f32 %v2108_v3, %v480_v31 }
 0x55f   :  { %v490_v35 = vrot.slane %v482_v34, %v2067_v21 }
 0x561   :  { %491 = vrot.lane.b32.xlu0 %v490_v35, %s1960_s3  ;;  %v266_v35 = vld [vmem:[%s2477_s1 + $0x4] sm:$0x3] }
 0x565   :  { %525 = vrot.lane.b32.xlu0 %v524_v36, %s1958_s0 }
 0x5d3   :  { %v492_v41 = vpop.permute.xlu0 %491 }
 0x5d4   :  { %v494_v44 = vmul.f32 %v1845_v40, %v492_v41 }
 0x5d6   :  { %496 = vrot.lane.b32.xlu1 %v494_v44, %s1960_s3 }
 0x5d7   :  { %v526_v48 = vpop.permute.xlu0 %525 }
 0x5da   :  { %502 = vperm.xlu1 %1817, %v265_v45  }
 0x648   :  { %v497_v46 = vpop.permute.xlu1 %496 }
 0x649   :  { %v2139_v47 = vadd.f32 %v1841_v29, %v497_v46 }
 0x64b   :  { %v528_v49 = vsub.f32 %v2139_v47, %v526_v48 }
 0x64d   :  { %v536_v52 = vrot.slane %v528_v49, %v2067_v21 }
 0x64f   :  { %537 = vrot.lane.b32.xlu0 %v536_v52, %s1958_s0 }
 0x655   :  { %v2144_v53 = vpop.permute.xlu1 %502 }
 0x6c1   :  { %v538_v54 = vpop.permute.xlu0 %537 }
 0x6c2   :  { %v540_v55 = vmul.f32 %v538_v54, %v2144_v53 }
 0x6c4   :  { %v2148_v56 = vadd.f32 %v540_v55, %v2108_v3  ;;  %v2165_v3 = vrot.slane %v106_v1, %v2067_v21 }
 0x6c6   :  { %v542_v57 = vpack.c.bf16 %v2148_v56, %v2148_v56  ;;  %v672_v43 = vrot.slane %v2148_v56, %v2067_v21 }
 0x6c8   :  { %1743 = vmatmul.mubr.msk.bf16.vlgmr.msra.gmra.mxu1 %vm284_vm4, %v542_v57  ;;  %v122_v57 = vcombine.high %v2165_v3, %v2165_v3 }
 0x6c9   :  { %1755 = vmatpush3.bf16.msra.mxu1 %v2019_v0  ;;  %1758 = vmatprep.mubr.msk.bf16.mxu1 %vm1956_vm1, %v1955_v2 }
 0x6ca   :  { %1756 = vmatprep.subr.bf16.mxu1 %v1955_v2 }
 0x6cd   :  { %1757 = vmatpush3.bf16.msra.mxu1 %v2036_v6 }
 0x6ce   :  { %1770 = vmatprep.subr.bf16.mxu1 %v1955_v2 }
 0x788   :  { %v580_v58 = vpop.f32.mrf.mxu1 }
 0x789   :  { %v600_v59 = vadd.f32 %v580_v58, %v2064_v18  ;;  %v586_v4 = vadd.f32 %v580_v58, %v2165_v3  ;;  %v593_v26 = vadd.f32 %v580_v58, %v2186_v24 }
 0x78a   :  { %v1744_v60 = vpop.f32.mrf.mxu1 }
 0x78b   :  { %v608_v61 = vrot.slane %v600_v59, %v2067_v21  ;;  %v1660_v5 = vmul.f32 -1.442695, %v586_v4  ;;  %v1661_v27 = vmul.f32 -1.442695, %v593_v26  ;;  %v230_v4 = vcombine.high %v2172_v33, %v2172_v33 }
 0x78c   :  { %v583_v62 = vpop.f32.mrf.mxu1 }
 0x78d   :  { %609 = vrot.lane.b32.xlu1 %v608_v61, %s1958_s0  ;;  %1846 = vpow2.f32 %v1660_v5 }
 0x78e   :  { %v1745_v63 = vpop.f32.mrf.mxu1 }
 0x79a   :  { %v1847_v8 = vpop.eup %1846 }
 0x79b   :  { %v590_v9 = vadd.f32 1.0, %v1847_v8 }
 0x79d   :  { %1848 = vrcp.f32 %v590_v9 }
 0x7aa   :  { %v1849_v10 = vpop.eup %1848 }
 0x7ff   :  { %v610_v11 = vpop.permute.xlu1 %609 }
 0x800   :  { %v612_v12 = vmul.f32 %v1849_v10, %v610_v11 }
 0x802   :  { %614 = vrot.lane.b32.xlu0 %v612_v12, %s1958_s0 }
 0x874   :  { %v615_v14 = vpop.permute.xlu0 %614 }
 0x875   :  { %v617_v15 = vadd.f32 %v615_v14, %v2172_v33  ;;  %v176_v33 = vcombine.high %v2186_v24, %v2186_v24 }
 0x877   :  { %1850 = vtanh.f32 %v617_v15 }
 0x878   :  { %1852 = vpow2.f32 %v1661_v27 }
 0x884   :  { %v1851_v16 = vpop.eup %1850 }
 0x885   :  { %v626_v17 = vrot.slane %v1851_v16, %v2067_v21  ;;  %v1853_v28 = vpop.eup %1852 }
 0x886   :  { %v597_v29 = vadd.f32 1.0, %v1853_v28 }
 0x887   :  { %627 = vrot.lane.b32.xlu1 %v626_v17, %s1958_s0 }
 0x888   :  { %1854 = vrcp.f32 %v597_v29 }
 0x895   :  { %v1855_v30 = vpop.eup %1854 }
 0x8f9   :  { %v628_v19 = vpop.permute.xlu1 %627 }
 0x8fa   :  { %v630_v20 = vsub.f32 %v2148_v56, %v628_v19 }
 0x8fc   :  { %v638_v22 = vrot.slane %v630_v20, %v2067_v21 }
 0x8fe   :  { %639 = vrot.lane.b32.xlu0 %v638_v22, %s1960_s3 }
 0x902   :  { %673 = vrot.lane.b32.xlu0 %v672_v43, %s1958_s0  ;;  %v267_v43 = vld [vmem:[%s2477_s1 + $0x6] sm:$0x3] }
 0x970   :  { %v640_v31 = vpop.permute.xlu0 %639 }
 0x971   :  { %v642_v34 = vmul.f32 %v1855_v30, %v640_v31 }
 0x973   :  { %644 = vrot.lane.b32.xlu1 %v642_v34, %s1960_s3 }
 0x974   :  { %v674_v37 = vpop.permute.xlu0 %673 }
 0x977   :  { %650 = vperm.xlu1 %1817, %v266_v35  }
 0x9e5   :  { %v645_v51 = vpop.permute.xlu1 %644 }
 0x9e6   :  { %v2193_v36 = vadd.f32 %v1851_v16, %v645_v51 }
 0x9e8   :  { %v676_v38 = vsub.f32 %v2193_v36, %v674_v37 }
 0x9ea   :  { %v684_v39 = vrot.slane %v676_v38, %v2067_v21 }
 0x9ec   :  { %685 = vrot.lane.b32.xlu0 %v684_v39, %s1958_s0 }
 0x9f2   :  { %v2198_v40 = vpop.permute.xlu1 %650 }
 0xa5e   :  { %v686_v41 = vpop.permute.xlu0 %685 }
 0xa5f   :  { %v688_v44 = vmul.f32 %v686_v41, %v2198_v40 }
 0xa61   :  { %v689_v45 = vadd.f32 %v688_v44, %v2148_v56 }
 0xa63   :  { %v690_v46 = vpack.c.bf16 %v689_v45, %v689_v45  ;;  %v820_v13 = vrot.slane %v689_v45, %v2067_v21 }
 0xa65   :  { %1751 = vmatmul.mubr.msk.bf16.vlgmr.msra.gmra.mxu0 %vm284_vm4, %v690_v46 }
 0xa66   :  { %1763 = vmatpush3.bf16.msra.mxu0 %v2019_v0  ;;  %1766 = vmatprep.mubr.msk.bf16.mxu0 %vm1956_vm1, %v1955_v2 }
 0xa67   :  { %1764 = vmatprep.subr.bf16.mxu0 %v1955_v2 }
 0xa6a   :  { %1765 = vmatpush3.bf16.msra.mxu0 %v2036_v6 }
 0xa6b   :  { %1778 = vmatprep.subr.bf16.mxu0 %v1955_v2 }
 0xb25   :  { %v728_v48 = vpop.f32.mrf.mxu0 }
 0xb26   :  { %v748_v49 = vadd.f32 %v728_v48, %v2064_v18  ;;  %v734_v58 = vadd.f32 %v728_v48, %v122_v57  ;;  %v741_v14 = vadd.f32 %v728_v48, %v176_v33 }
 0xb27   :  { %v1752_v52 = vpop.f32.mrf.mxu0 }
 0xb28   :  { %v756_v54 = vrot.slane %v748_v49, %v2067_v21  ;;  %v1663_v59 = vmul.f32 -1.442695, %v734_v58  ;;  %v1664_v15 = vmul.f32 -1.442695, %v741_v14 }
 0xb29   :  { %v731_v55 = vpop.f32.mrf.mxu0 }
 0xb2a   :  { %757 = vrot.lane.b32.xlu1 %v756_v54, %s1958_s0  ;;  %1856 = vpow2.f32 %v1663_v59 }
 0xb2b   :  { %v1753_v56 = vpop.f32.mrf.mxu0 }
 0xb37   :  { %v1857_v60 = vpop.eup %1856 }
 0xb38   :  { %v738_v61 = vadd.f32 1.0, %v1857_v60 }
 0xb3a   :  { %1858 = vrcp.f32 %v738_v61 }
 0xb47   :  { %v1859_v62 = vpop.eup %1858 }
 0xb9c   :  { %v758_v63 = vpop.permute.xlu1 %757 }
 0xb9d   :  { %v760_v1 = vmul.f32 %v1859_v62, %v758_v63 }
 0xb9f   :  { %762 = vrot.lane.b32.xlu0 %v760_v1, %s1958_s0 }
 0xc11   :  { %v763_v5 = vpop.permute.xlu0 %762 }
 0xc12   :  { %v765_v8 = vadd.f32 %v763_v5, %v230_v4  ;;  %v2280_v5 = vadd.f32 %v2098_v50, %v2071_v25 }
 0xc14   :  { %1860 = vtanh.f32 %v765_v8  ;;  %v2284_v8 = vrot.slane %v2280_v5, %v2067_v21 }
 0xc15   :  { %1862 = vpow2.f32 %v1664_v15 }
 0xc21   :  { %v1861_v9 = vpop.eup %1860 }
 0xc22   :  { %v774_v3 = vrot.slane %v1861_v9, %v2067_v21  ;;  %v1863_v16 = vpop.eup %1862 }
 0xc23   :  { %v745_v17 = vadd.f32 1.0, %v1863_v16 }
 0xc24   :  { %775 = vrot.lane.b32.xlu1 %v774_v3, %s1958_s0 }
 0xc25   :  { %1864 = vrcp.f32 %v745_v17 }
 0xc32   :  { %v1865_v19 = vpop.eup %1864 }
 0xc96   :  { %v776_v10 = vpop.permute.xlu1 %775 }
 0xc97   :  { %v778_v11 = vsub.f32 %v689_v45, %v776_v10 }
 0xc99   :  { %v786_v12 = vrot.slane %v778_v11, %v2067_v21 }
 0xc9b   :  { %787 = vrot.lane.b32.xlu0 %v786_v12, %s1960_s3 }
 0xc9f   :  { %821 = vrot.lane.b32.xlu0 %v820_v13, %s1958_s0 }
 0xd0d   :  { %v788_v20 = vpop.permute.xlu0 %787 }
 0xd0e   :  { %v790_v22 = vmul.f32 %v1865_v19, %v788_v20 }
 0xd10   :  { %792 = vrot.lane.b32.xlu1 %v790_v22, %s1960_s3 }
 0xd11   :  { %v822_v24 = vpop.permute.xlu0 %821 }
 0xd14   :  { %798 = vperm.xlu1 %1817, %v267_v43  }
 0xd82   :  { %v793_v23 = vpop.permute.xlu1 %792 }
 0xd83   :  { %v2229_v26 = vadd.f32 %v1861_v9, %v793_v23 }
 0xd85   :  { %v824_v27 = vsub.f32 %v2229_v26, %v822_v24 }
 0xd87   :  { %v832_v28 = vrot.slane %v824_v27, %v2067_v21 }
 0xd89   :  { %833 = vrot.lane.b32.xlu0 %v832_v28, %s1958_s0 }
 0xd8f   :  { %v2234_v29 = vpop.permute.xlu1 %798 }
 0xdfb   :  { %v834_v30 = vpop.permute.xlu0 %833 }
 0xdfc   :  { %v836_v31 = vmul.f32 %v834_v30, %v2234_v29 }
 0xdfe   :  { %v2237_v34 = vadd.f32 %v836_v31, %v689_v45  ;;  %v2253_v45 = vadd.f32 %v2077_v32, %v2071_v25  ;;  %v2263_v32 = vadd.f32 %v2085_v42, %v2071_v25  ;;  %v268_v25 = vld [vmem:[%s2477_s1 + $0x8] sm:$0x3] }
 0xe00   :  { %v838_v35 = vpack.c.bf16 %v2237_v34, %v2237_v34  ;;  %v2257_v46 = vrot.slane %v2253_v45, %v2067_v21  ;;  %v2267_v58 = vrot.slane %v2263_v32, %v2067_v21  ;;  %v968_v42 = vrot.slane %v2237_v34, %v2067_v21 }
 0xe02   :  { %1759 = vmatmul.mubr.msk.bf16.vlgmr.msra.gmra.mxu1 %vm284_vm4, %v838_v35 }
 0xe03   :  { %1771 = vmatpush3.bf16.msra.mxu1 %v2019_v0  ;;  %1774 = vmatprep.mubr.msk.bf16.mxu1 %vm1956_vm1, %v1955_v2 }
 0xe04   :  { %1772 = vmatprep.subr.bf16.mxu1 %v1955_v2 }
 0xe07   :  { %1773 = vmatpush3.bf16.msra.mxu1 %v2036_v6 }
 0xe08   :  { %1786 = vmatprep.subr.bf16.mxu1 %v1955_v2 }
 0xec2   :  { %v876_v51 = vpop.f32.mrf.mxu1 }
 0xec3   :  { %v896_v37 = vadd.f32 %v876_v51, %v2064_v18  ;;  %v882_v48 = vadd.f32 %v876_v51, %v2257_v46  ;;  %v889_v9 = vadd.f32 %v876_v51, %v2284_v8 }
 0xec4   :  { %v1760_v38 = vpop.f32.mrf.mxu1 }
 0xec5   :  { %v904_v39 = vrot.slane %v896_v37, %v2067_v21  ;;  %v1666_v49 = vmul.f32 -1.442695, %v882_v48  ;;  %v1667_v3 = vmul.f32 -1.442695, %v889_v9 }
 0xec6   :  { %v879_v41 = vpop.f32.mrf.mxu1 }
 0xec7   :  { %905 = vrot.lane.b32.xlu1 %v904_v39, %s1958_s0  ;;  %1866 = vpow2.f32 %v1666_v49 }
 0xec8   :  { %v1761_v44 = vpop.f32.mrf.mxu1 }
 0xec9   :  { %v246_v44 = vcombine.high %v2267_v58, %v2267_v58 }
 0xed4   :  { %v1867_v52 = vpop.eup %1866 }
 0xed5   :  { %v886_v54 = vadd.f32 1.0, %v1867_v52 }
 0xed7   :  { %1868 = vrcp.f32 %v886_v54 }
 0xee4   :  { %v1869_v55 = vpop.eup %1868 }
 0xf39   :  { %v906_v56 = vpop.permute.xlu1 %905 }
 0xf3a   :  { %v908_v57 = vmul.f32 %v1869_v55, %v906_v56 }
 0xf3c   :  { %910 = vrot.lane.b32.xlu0 %v908_v57, %s1958_s0 }
 0xfae   :  { %v911_v59 = vpop.permute.xlu0 %910 }
 0xfaf   :  { %v913_v60 = vadd.f32 %v911_v59, %v2267_v58  ;;  %v192_v58 = vcombine.high %v2284_v8, %v2284_v8 }
 0xfb1   :  { %1870 = vtanh.f32 %v913_v60 }
 0xfb2   :  { %1872 = vpow2.f32 %v1667_v3 }
 0xfbe   :  { %v1871_v61 = vpop.eup %1870 }
 0xfbf   :  { %v922_v62 = vrot.slane %v1871_v61, %v2067_v21  ;;  %v1873_v10 = vpop.eup %1872 }
 0xfc0   :  { %v893_v11 = vadd.f32 1.0, %v1873_v10 }
 0xfc1   :  { %923 = vrot.lane.b32.xlu1 %v922_v62, %s1958_s0 }
 0xfc2   :  { %1874 = vrcp.f32 %v893_v11 }
 0xfcf   :  { %v1875_v12 = vpop.eup %1874 }
0x1033   :  { %v924_v63 = vpop.permute.xlu1 %923 }
0x1034   :  { %v926_v1 = vsub.f32 %v2237_v34, %v924_v63 }
0x1036   :  { %v934_v4 = vrot.slane %v926_v1, %v2067_v21 }
0x1038   :  { %935 = vrot.lane.b32.xlu0 %v934_v4, %s1960_s3 }
0x103c   :  { %969 = vrot.lane.b32.xlu0 %v968_v42, %s1958_s0  ;;  %v269_v42 = vld [vmem:[%s2477_s1 + $0xa] sm:$0x3] }
0x10aa   :  { %v936_v13 = vpop.permute.xlu0 %935 }
0x10ab   :  { %v938_v33 = vmul.f32 %v1875_v12, %v936_v13 }
0x10ad   :  { %940 = vrot.lane.b32.xlu1 %v938_v33, %s1960_s3 }
0x10ae   :  { %v970_v15 = vpop.permute.xlu0 %969 }
0x10b1   :  { %946 = vperm.xlu1 %1817, %v268_v25  }
0x111f   :  { %v941_v50 = vpop.permute.xlu1 %940 }
0x1120   :  { %v2291_v14 = vadd.f32 %v1871_v61, %v941_v50 }
0x1122   :  { %v972_v16 = vsub.f32 %v2291_v14, %v970_v15 }
0x1124   :  { %v980_v17 = vrot.slane %v972_v16, %v2067_v21 }
0x1126   :  { %981 = vrot.lane.b32.xlu0 %v980_v17, %s1958_s0 }
0x112c   :  { %v2296_v19 = vpop.permute.xlu1 %946 }
0x1198   :  { %v982_v20 = vpop.permute.xlu0 %981 }
0x1199   :  { %v984_v22 = vmul.f32 %v982_v20, %v2296_v19 }
0x119b   :  { %v985_v43 = vadd.f32 %v984_v22, %v2237_v34 }
0x119d   :  { %v986_v23 = vpack.c.bf16 %v985_v43, %v985_v43  ;;  %v1116_v57 = vrot.slane %v985_v43, %v2067_v21 }
0x119f   :  { %1767 = vmatmul.mubr.msk.bf16.vlgmr.msra.gmra.mxu0 %vm284_vm4, %v986_v23 }
0x11a0   :  { %1779 = vmatpush3.bf16.msra.mxu0 %v2019_v0  ;;  %1782 = vmatprep.mubr.msk.bf16.mxu0 %vm1956_vm1, %v1955_v2  ;;  %v138_v0 = vcombine.high %v2257_v46, %v2257_v46 }
0x11a1   :  { %1780 = vmatprep.subr.bf16.mxu0 %v1955_v2 }
0x11a4   :  { %1781 = vmatpush3.bf16.msra.mxu0 %v2036_v6 }
0x11a5   :  { %1792 = vmatprep.subr.bf16.mxu0 %v1955_v2 }
0x125f   :  { %v1024_v24 = vpop.f32.mrf.mxu0 }
0x1260   :  { %v1044_v27 = vadd.f32 %v1024_v24, %v2064_v18  ;;  %v1030_v35 = vadd.f32 %v1024_v24, %v138_v0  ;;  %v1037_v59 = vadd.f32 %v1024_v24, %v192_v58  ;;  %v123_v24 = vcombine.high %v2253_v45, %v2253_v45 }
0x1261   :  { %v1768_v28 = vpop.f32.mrf.mxu0 }
0x1262   :  { %v1052_v30 = vrot.slane %v1044_v27, %v2067_v21  ;;  %v1669_v51 = vmul.f32 -1.442695, %v1030_v35  ;;  %v1670_v60 = vmul.f32 -1.442695, %v1037_v59 }
0x1263   :  { %v1027_v31 = vpop.f32.mrf.mxu0 }
0x1264   :  { %1053 = vrot.lane.b32.xlu1 %v1052_v30, %s1958_s0  ;;  %1876 = vpow2.f32 %v1669_v51  ;;  %v231_v51 = vcombine.high %v2263_v32, %v2263_v32 }
0x1265   :  { %v1769_v34 = vpop.f32.mrf.mxu0 }
0x1271   :  { %v1877_v37 = vpop.eup %1876 }
0x1272   :  { %v1034_v6 = vadd.f32 1.0, %v1877_v37  ;;  %v2348_v37 = vrot.slane %v231_v51, %v2067_v21 }
0x1274   :  { %1878 = vrcp.f32 %v1034_v6 }
0x1281   :  { %v1879_v38 = vpop.eup %1878 }
0x12d6   :  { %v1054_v39 = vpop.permute.xlu1 %1053 }
0x12d7   :  { %v1056_v41 = vmul.f32 %v1879_v38, %v1054_v39 }
0x12d9   :  { %1058 = vrot.lane.b32.xlu0 %v1056_v41, %s1958_s0 }
0x134b   :  { %v1059_v48 = vpop.permute.xlu0 %1058 }
0x134c   :  { %v1061_v49 = vadd.f32 %v1059_v48, %v246_v44 }
0x134e   :  { %1880 = vtanh.f32 %v1061_v49  ;;  %v177_v49 = vcombine.high %v2280_v5, %v2280_v5 }
0x134f   :  { %1882 = vpow2.f32 %v1670_v60  ;;  %v270_v60 = vld [vmem:[%s2477_s1 + $0xc] sm:$0x3] }
0x135b   :  { %v1881_v52 = vpop.eup %1880 }
0x135c   :  { %v1070_v46 = vrot.slane %v1881_v52, %v2067_v21  ;;  %v1883_v61 = vpop.eup %1882 }
0x135d   :  { %v1041_v62 = vadd.f32 1.0, %v1883_v61 }
0x135e   :  { %1071 = vrot.lane.b32.xlu1 %v1070_v46, %s1958_s0 }
0x135f   :  { %1884 = vrcp.f32 %v1041_v62 }
0x136c   :  { %v1885_v63 = vpop.eup %1884 }
0x13d0   :  { %v1072_v54 = vpop.permute.xlu1 %1071 }
0x13d1   :  { %v1074_v55 = vsub.f32 %v985_v43, %v1072_v54 }
0x13d3   :  { %v1082_v56 = vrot.slane %v1074_v55, %v2067_v21 }
0x13d5   :  { %1083 = vrot.lane.b32.xlu0 %v1082_v56, %s1960_s3 }
0x13d9   :  { %1117 = vrot.lane.b32.xlu0 %v1116_v57, %s1958_s0 }
0x1447   :  { %v1084_v1 = vpop.permute.xlu0 %1083 }
0x1448   :  { %v1086_v4 = vmul.f32 %v1885_v63, %v1084_v1 }
0x144a   :  { %1088 = vrot.lane.b32.xlu1 %v1086_v4, %s1960_s3 }
0x144b   :  { %v1118_v8 = vpop.permute.xlu0 %1117 }
0x144e   :  { %1094 = vperm.xlu1 %1817, %v269_v42  }
0x14bc   :  { %v1089_v9 = vpop.permute.xlu1 %1088 }
0x14bd   :  { %v2327_v3 = vadd.f32 %v1881_v52, %v1089_v9  ;;  %v2360_v52 = vrot.slane %v177_v49, %v2067_v21 }
0x14bf   :  { %v1120_v10 = vsub.f32 %v2327_v3, %v1118_v8 }
0x14c1   :  { %v1128_v11 = vrot.slane %v1120_v10, %v2067_v21 }
0x14c3   :  { %1129 = vrot.lane.b32.xlu0 %v1128_v11, %s1958_s0 }
0x14c9   :  { %v2332_v12 = vpop.permute.xlu1 %1094 }
0x1535   :  { %v1130_v13 = vpop.permute.xlu0 %1129 }
0x1536   :  { %v1132_v33 = vmul.f32 %v1130_v13, %v2332_v12 }
0x1538   :  { %v1133_v25 = vadd.f32 %v1132_v33, %v985_v43  ;;  %v137_v43 = vrot.slane %v123_v24, %v2067_v21 }
0x153a   :  { %v1134_v50 = vpack.c.bf16 %v1133_v25, %v1133_v25  ;;  %v1264_v32 = vrot.slane %v1133_v25, %v2067_v21 }
0x153c   :  { %1775 = vmatmul.mubr.msk.bf16.vlgmr.msra.gmra.mxu1 %vm284_vm4, %v1134_v50 }
0x153d   :  { %1788 = vmatprep.mubr.msk.bf16.mxu1 %vm1956_vm1, %v1955_v2 }
0x15fc   :  { %v1172_v15 = vpop.f32.mrf.mxu1 }
0x15fd   :  { %v1192_v16 = vadd.f32 %v1172_v15, %v2064_v18  ;;  %v1178_v27 = vadd.f32 %v1172_v15, %v137_v43  ;;  %v1185_v46 = vadd.f32 %v1172_v15, %v2360_v52 }
0x15fe   :  { %v1776_v17 = vpop.f32.mrf.mxu1 }
0x15ff   :  { %v1200_v20 = vrot.slane %v1192_v16, %v2067_v21  ;;  %v1672_v28 = vmul.f32 -1.442695, %v1178_v27  ;;  %v1673_v54 = vmul.f32 -1.442695, %v1185_v46 }
0x1600   :  { %v1175_v22 = vpop.f32.mrf.mxu1 }
0x1601   :  { %1201 = vrot.lane.b32.xlu1 %v1200_v20, %s1958_s0  ;;  %1886 = vpow2.f32 %v1672_v28 }
0x1602   :  { %v1777_v23 = vpop.f32.mrf.mxu1 }
0x160e   :  { %v1887_v30 = vpop.eup %1886 }
0x160f   :  { %v1182_v31 = vadd.f32 1.0, %v1887_v30 }
0x1611   :  { %1888 = vrcp.f32 %v1182_v31 }
0x161e   :  { %v1889_v34 = vpop.eup %1888 }
0x1673   :  { %v1202_v0 = vpop.permute.xlu1 %1201 }
0x1674   :  { %v1204_v35 = vmul.f32 %v1889_v34, %v1202_v0  ;;  %v1441_v0 = vld [vmem:[%s2482_s6] sm:$0x3] }
0x1676   :  { %1206 = vrot.lane.b32.xlu0 %v1204_v35, %s1958_s0  ;;  %v1455_v35 = vsel %vm1453_vm5, %v1441_v0, 0 }
0x1677   :  { %1787 = vmatpush3.bf16.msra.mxu1 %v1455_v35 }
0x1678   :  { %1800 = vmatprep.subr.bf16.mxu1 %v1955_v2 }
0x16e8   :  { %v1207_v45 = vpop.permute.xlu0 %1206 }
0x16e9   :  { %v1209_v6 = vadd.f32 %v1207_v45, %v2348_v37 }
0x16eb   :  { %1890 = vtanh.f32 %v1209_v6 }
0x16ec   :  { %1892 = vpow2.f32 %v1673_v54 }
0x16f8   :  { %v1891_v38 = vpop.eup %1890 }
0x16f9   :  { %v1218_v39 = vrot.slane %v1891_v38, %v2067_v21  ;;  %v1893_v55 = vpop.eup %1892 }
0x16fa   :  { %v1189_v56 = vadd.f32 1.0, %v1893_v55 }
0x16fb   :  { %1219 = vrot.lane.b32.xlu1 %v1218_v39, %s1958_s0 }
0x16fc   :  { %1894 = vrcp.f32 %v1189_v56 }
0x1709   :  { %v1895_v57 = vpop.eup %1894 }
0x176d   :  { %v1220_v41 = vpop.permute.xlu1 %1219 }
0x176e   :  { %v1222_v44 = vsub.f32 %v1133_v25, %v1220_v41 }
0x1770   :  { %v1230_v48 = vrot.slane %v1222_v44, %v2067_v21  ;;  %v193_v44 = vcombine.high %v2360_v52, %v2360_v52  ;;  %v956_v52 = vrot.slane %v2291_v14, %v2067_v21  ;;  %v2430_v14 = vld [vmem:[%s2480_s4] sm:$0x3f]  ;;  %s1963_s4 = smov [#allocation2]  }
0x1772   :  { %1231 = vrot.lane.b32.xlu0 %v1230_v48, %s1960_s3 }
0x1776   :  { %1265 = vrot.lane.b32.xlu0 %v1264_v32, %s1958_s0 }
0x17e4   :  { %v1232_v58 = vpop.permute.xlu0 %1231 }
0x17e5   :  { %v1234_v59 = vmul.f32 %v1895_v57, %v1232_v58  ;;  %v271_v57 = vld [vmem:[%s2477_s1 + $0xe] sm:$0x3]  ;;  %v660_v58 = vrot.slane %v2193_v36, %v2067_v21  ;;  %v1824_v36 = vld [vmem:[%s2483_s7 + $0x10] sm:$0xff]  }
0x17e7   :  { %1236 = vrot.lane.b32.xlu1 %v1234_v59, %s1960_s3 }
0x17e8   :  { %v1266_v62 = vpop.permute.xlu0 %1265 }
0x17eb   :  { %1242 = vperm.xlu1 %1817, %v270_v60   ;;  %v1444_v60 = vsub.s32 5, %v2040_v7 }
0x1859   :  { %v1237_v5 = vpop.permute.xlu1 %1236 }
0x185a   :  { %v2367_v61 = vadd.f32 %v1891_v38, %v1237_v5 }
0x185c   :  { %v1268_v63 = vsub.f32 %v2367_v61, %v1266_v62  ;;  %v1252_v59 = vrot.slane %v2367_v61, %v2067_v21  ;;  %v1823_v62 = vld [vmem:[%s2483_s7] sm:$0xff]   ;;  %v1445_v61 = vrot.slane %v2430_v14, %v1444_v60 }
0x185e   :  { %v1276_v1 = vrot.slane %v1268_v63, %v2067_v21 }
0x1860   :  { %1277 = vrot.lane.b32.xlu0 %v1276_v1, %s1958_s0 }
0x1866   :  { %v2372_v4 = vpop.permute.xlu1 %1242 }
0x18d2   :  { %v1278_v42 = vpop.permute.xlu0 %1277 }
0x18d3   :  { %v1280_v9 = vmul.f32 %v1278_v42, %v2372_v4 }
0x18d5   :  { %v2375_v8 = vadd.f32 %v1280_v9, %v1133_v25  ;;  %v139_v25 = vcombine.high %v137_v43, %v137_v43  ;;  %v247_v43 = vcombine.high %v2348_v37, %v2348_v37 }
0x18d7   :  { %v1282_v10 = vpack.c.bf16 %v2375_v8, %v2375_v8  ;;  %v1412_v41 = vrot.slane %v2375_v8, %v2067_v21 }
0x18d9   :  { %1783 = vmatmul.mubr.msk.bf16.vlgmr.msra.gmra.mxu0 %vm284_vm4, %v1282_v10 }
0x18da   :  { %1796 = vmatprep.mubr.msk.bf16.mxu0 %vm1956_vm1, %v1955_v2  ;;  %1793 = vmatpush3.bf16.msra.mxu0 %v1824_v36 }
0x18db   :  { %1794 = vmatprep.subr.bf16.mxu0 %v1955_v2 }
0x1999   :  { %v1320_v11 = vpop.f32.mrf.mxu0 }
0x199a   :  { %v1340_v13 = vadd.f32 %v1320_v11, %v2064_v18  ;;  %v1326_v17 = vadd.f32 %v1320_v11, %v139_v25  ;;  %v1439_v18 = vld [vmem:[%s2481_s5] sm:$0x3]  ;;  %v1333_v48 = vadd.f32 %v1320_v11, %v193_v44 }
0x199b   :  { %v1784_v33 = vpop.f32.mrf.mxu0  ;;  %v1440_v30 = vpack.c.bf16 %v1439_v18, %v1439_v18 }
0x199c   :  { %v1348_v50 = vrot.slane %v1340_v13, %v2067_v21  ;;  %v1675_v20 = vmul.f32 -1.442695, %v1326_v17  ;;  %v1676_v32 = vmul.f32 -1.442695, %v1333_v48  ;;  %v1825_v33 = vld [vmem:[%s2483_s7 + $0x8] sm:$0xff]   ;;  %s1624_s7 = sshll.u32 %s1963_s4, 4  ;;  %s1625_s7 = int_to_ptr.vmem [resolvable:$true] %s1624_s7 }
0x199d   :  { %v1323_v15 = vpop.f32.mrf.mxu0  ;;  %1795 = vmatpush3.bf16.msra.mxu0 %v1825_v33  ;;  %p1916_p1 = scmp.lt.s32.totalorder %s1625_s7, %s1625_s7 }
0x199e   :  { %1349 = vrot.lane.b32.xlu1 %v1348_v50, %s1958_s0  ;;  %1896 = vpow2.f32 %v1675_v20  ;;  %v808_v20 = vrot.slane %v2229_v26, %v2067_v21 }
0x199f   :  { %v1785_v16 = vpop.f32.mrf.mxu0 }
0x19a2   :  { %1447 = vrot.lane.b32.xlu1 %v1440_v30, %s1962_s14 }
0x19ab   :  { %v1897_v22 = vpop.eup %1896 }
0x19ac   :  { %v1330_v23 = vadd.f32 1.0, %v1897_v22 }
0x19ae   :  { %1898 = vrcp.f32 %v1330_v23  ;;  %v1104_v23 = vrot.slane %v2327_v3, %v2067_v21 }
0x19bb   :  { %v1899_v24 = vpop.eup %1898 }
0x1a10   :  { %v1350_v27 = vpop.permute.xlu1 %1349 }
0x1a11   :  { %v1352_v28 = vmul.f32 %v1899_v24, %v1350_v27 }
0x1a13   :  { %1354 = vrot.lane.b32.xlu0 %v1352_v28, %s1958_s0 }
0x1a14   :  { %v1448_v45 = vpop.permute.xlu1 %1447 }
0x1a15   :  { %1789 = vmatmul.mubr.msk.bf16.vlgmr.msra.gmra.mxu1 %vm1449_vm6, %v1448_v45 }
0x1a16   :  { %1802 = vmatprep.mubr.msk.bf16.mxu1 %vm1956_vm1, %v1955_v2  ;;  %1801 = vmatpush3.bf16.msra.mxu1 %v1823_v62  ;;  %v512_v2 = vrot.slane %v2139_v47, %v2067_v21 }
0x1a85   :  { %v1355_v31 = vpop.permute.xlu0 %1354 }
0x1a86   :  { %v1357_v34 = vadd.f32 %v1355_v31, %v247_v43 }
0x1a88   :  { %1900 = vtanh.f32 %v1357_v34 }
0x1a89   :  { %1902 = vpow2.f32 %v1676_v32 }
0x1a95   :  { %v1901_v51 = vpop.eup %1900 }
0x1a96   :  { %v1366_v6 = vrot.slane %v1901_v51, %v2067_v21  ;;  %v1903_v49 = vpop.eup %1902 }
0x1a97   :  { %v1337_v46 = vadd.f32 1.0, %v1903_v49 }
0x1a98   :  { %1367 = vrot.lane.b32.xlu0 %v1366_v6, %s1958_s0 }
0x1a99   :  { %1904 = vrcp.f32 %v1337_v46 }
0x1aa6   :  { %v1905_v54 = vpop.eup %1904 }
0x1ad5   :  { %v1491_v5 = vpop.f32.mrf.mxu1 }
0x1ad6   :  { %v1492_v1 = vadd.f32 %v1491_v5, %v1445_v61 }
0x1ad7   :  { %v1790_v63 = vpop.f32.mrf.mxu1 }
0x1ad8   :  { %1906 = vtanh.f32 %v1492_v1 }
0x1ad9   :  { %v1494_v42 = vpop.f32.mrf.mxu1 }
0x1adb   :  { %v1791_v9 = vpop.f32.mrf.mxu1 }
0x1ae5   :  { %v1907_v10 = vpop.eup %1906 }
0x1ae6   :  { %v1498_v11 = vadd.f32 %v1907_v10, %v1439_v18 }
0x1ae8   :  { %v1505_v13 = vpack.c.bf16 %v1498_v11, %v1498_v11 }
0x1aea   :  { %1803 = vmatmul.mubr.msk.bf16.vlgmr.msra.gmra.mxu1 %vm1568_vm7, %v1505_v13 }
0x1b0a   :  { %v1368_v37 = vpop.permute.xlu0 %1367 }
0x1b0b   :  { %v1370_v38 = vsub.f32 %v2375_v8, %v1368_v37 }
0x1b0d   :  { %v1378_v39 = vrot.slane %v1370_v38, %v2067_v21 }
0x1b0f   :  { %1379 = vrot.lane.b32.xlu1 %v1378_v39, %s1960_s3 }
0x1b13   :  { %1413 = vrot.lane.b32.xlu1 %v1412_v41, %s1958_s0 }
0x1b81   :  { %v1380_v55 = vpop.permute.xlu1 %1379 }
0x1b82   :  { %v1382_v56 = vmul.f32 %v1905_v54, %v1380_v55 }
0x1b84   :  { %1384 = vrot.lane.b32.xlu0 %v1382_v56, %s1960_s3 }
0x1b85   :  { %v1414_v16 = vpop.permute.xlu1 %1413 }
0x1b88   :  { %1390 = vperm.xlu0 %1818, %v271_v57  }
0x1b8c   :  { %661 = vrot.lane.b32.xlu0 %v660_v58, %s1958_s0 }
0x1b90   :  { %957 = vrot.lane.b32.xlu0 %v956_v52, %s1958_s0 }
0x1b94   :  { %1253 = vrot.lane.b32.xlu0 %v1252_v59, %s1958_s0 }
0x1baa   :  { %v1606_v3 = vpop.f32.mrf.mxu1 }
0x1bf6   :  { %v1385_v50 = vpop.permute.xlu0 %1384 }
0x1bf7   :  { %v1387_v15 = vadd.f32 %v1901_v51, %v1385_v50 }
0x1bf9   :  { %v1416_v25 = vsub.f32 %v1387_v15, %v1414_v16  ;;  %v1400_v47 = vrot.slane %v1387_v15, %v2067_v21 }
0x1bfb   :  { %v1424_v17 = vrot.slane %v1416_v25, %v2067_v21 }
0x1bfd   :  { %1425 = vrot.lane.b32.xlu1 %v1424_v17, %s1958_s0 }
0x1c01   :  { %513 = vrot.lane.b32.xlu1 %v512_v2, %s1958_s0 }
0x1c03   :  { %v1391_v22 = vpop.permute.xlu0 %1390 }
0x1c05   :  { %809 = vrot.lane.b32.xlu1 %v808_v20, %s1958_s0 }
0x1c07   :  { %v662_v24 = vpop.permute.xlu0 %661 }
0x1c08   :  { %v664_v27 = vmul.f32 %v662_v24, %v2198_v40  ;;  %v1804_v40 = vpop.f32.mrf.mxu1 }
0x1c09   :  { %1105 = vrot.lane.b32.xlu1 %v1104_v23, %s1958_s0 }
0x1c0a   :  { %1433 = vst.msk [vmem:[#allocation2 + $0x4] sm:$0x3] %vm1430_vm3, %v664_v27  ;;  %v1609_v43 = vpop.f32.mrf.mxu1 }
0x1c0b   :  { %v958_v28 = vpop.permute.xlu0 %957 }
0x1c0c   :  { %v960_v18 = vmul.f32 %v958_v28, %v2296_v19  ;;  %v1805_v0 = vpop.f32.mrf.mxu1 }
0x1c0d   :  { %1401 = vrot.lane.b32.xlu1 %v1400_v47, %s1958_s0  ;;  %s1911_s0 = scalar_lea.vmem %s1625_s7, 256 }
0x1c0e   :  { %1435 = vst.msk [vmem:[#allocation2 + $0x8] sm:$0x3] %vm1430_vm3, %v960_v18  ;;  %p1912_p0 = scmp.ne.s32.totalorder %s1625_s7, %s1911_s0  ;;  %p1917_p2 = scmp.lt.s32.totalorder %s1911_s0, %s1911_s0 }
0x1c0f   :  { %v1254_v26 = vpop.permute.xlu0 %1253 }
0x1c10   :  { %v1256_v30 = vmul.f32 %v1254_v26, %v2372_v4  ;;  %p1918_p3 = por %p1917_p2, %p1916_p1 }
0x1c12   :  { %1437 = vst.msk [vmem:[#allocation2 + $0xc] sm:$0x3] %vm1430_vm3, %v1256_v30  ;;  %p1919_p4 = pnand %p1918_p3, %p1912_p0 }
0x1c6f   :  { %v1426_v31 = vpop.permute.xlu1 %1425 }
0x1c70   :  { %v1428_v34 = vmul.f32 %v1426_v31, %v1391_v22 }
0x1c72   :  { %v1429_v21 = vadd.f32 %v1428_v34, %v2375_v8 }
0x1c73   :  { %v514_v35 = vpop.permute.xlu1 %513 }
0x1c74   :  { %v1506_v51 = vpack.c.bf16 %v1429_v21, %v1429_v21  ;;  %v516_v19 = vmul.f32 %v514_v35, %v2144_v53 }
0x1c76   :  { %1432 = vst.msk [vmem:[#allocation2 + $0x2] sm:$0x3] %vm1430_vm3, %v516_v19  ;;  %1797 = vmatmul.mubr.msk.bf16.vlgmr.msra.gmra.mxu0 %vm284_vm4, %v1506_v51 }
0x1c77   :  { %v810_v45 = vpop.permute.xlu1 %809 }
0x1c78   :  { %v812_v4 = vmul.f32 %v810_v45, %v2234_v29 }
0x1c7a   :  { %1434 = vst.msk [vmem:[#allocation2 + $0x6] sm:$0x3] %vm1430_vm3, %v812_v4 }
0x1c7b   :  { %v1106_v6 = vpop.permute.xlu1 %1105 }
0x1c7c   :  { %v1108_v37 = vmul.f32 %v1106_v6, %v2332_v12 }
0x1c7e   :  { %1436 = vst.msk [vmem:[#allocation2 + $0xa] sm:$0x3] %vm1430_vm3, %v1108_v37 }
0x1c7f   :  { %v1402_v38 = vpop.permute.xlu1 %1401 }
0x1c80   :  { %v1404_v8 = vmul.f32 %v1402_v38, %v1391_v22 }
0x1c82   :  { %1438 = vst.msk [vmem:[#allocation2 + $0xe] sm:$0x3] %vm1430_vm3, %v1404_v8 }
0x1c83   :  { %1922 = shalt.err (!%p1919_p4)
}
0x1c84   :  { %s1964_s23 = smov 2   ;;  %v1614_v53 = vsub.s32 4, %v2040_v7  ;;  %s1965_s26 = smov [#allocation4]  }
0x1c85   :  { %1630 = dma.vmem_to_hbm [thread:$0]  %s1625_s7, 256, %s2484_s8, [#allocation3], %s1960_s3, %s1960_s3, %s1964_s23  }
0x1c86   :  { %v1615_v29 = vrot.slane %v2430_v14, %v1614_v53  ;;  %s1637_s27 = sshll.u32 %s1965_s26, 4  ;;  %s1638_s27 = int_to_ptr.vmem [resolvable:$true] %s1637_s27 }
0x1c87   :  { %s1931_s28 = scalar_lea.vmem %s1638_s27, 32  ;;  %p1936_p6 = scmp.lt.s32.totalorder %s1638_s27, %s1638_s27 }
0x1c88   :  { %p1932_p5 = scmp.ne.s32.totalorder %s1638_s27, %s1931_s28  ;;  %p1937_p7 = scmp.lt.s32.totalorder %s1931_s28, %s1931_s28 }
0x1c8a   :  { %p1938_p8 = por %p1937_p7, %p1936_p6 }
0x1c8c   :  { %p1939_p9 = pnand %p1938_p8, %p1932_p5 }
0x1d36   :  { %v1556_v12 = vpop.f32.mrf.mxu0 }
0x1d37   :  { %v1607_v39 = vadd.f32 %v1606_v3, %v1556_v12 }
0x1d38   :  { %v1798_v41 = vpop.f32.mrf.mxu0 }
0x1d39   :  { %v1616_v44 = vadd.f32 %v1615_v29, %v1607_v39 }
0x1d3a   :  { %v1559_v48 = vpop.f32.mrf.mxu0 }
0x1d3b   :  { %1908 = vtanh.f32 %v1616_v44 }
0x1d3c   :  { %v1799_v32 = vpop.f32.mrf.mxu0 }
0x1d48   :  { %v1909_v49 = vpop.eup %1908 }
0x1d49   :  { %1618 = vst.msk [vmem:[#allocation4] sm:$0x3] %vm1430_vm3, %v1909_v49 }
0x1d4a   :  { %1942 = shalt.err (!%p1939_p9)
}
0x1d4b   :  { %1640 = dma.vmem_to_hbm [thread:$0]  %s1638_s27, 32, %s2485_s9, [#allocation5]  }
0x1d4c   :  { %1951 = dma.done.wait [#allocation3], 256  }
0x1d4d   :  { %1952 = vsyncadd [#allocation3], 4294967040 }
0x1d4e   :  { %1953 = dma.done.wait [#allocation5], 32  }
0x1d4f   :  { %1954 = vsyncadd [#allocation5], 4294967264 }
0x1d50   :  { %1647 = vsyncpa [#allocation3], 1 }
0x1d51   :  { %1648 = vsyncpa [#allocation5], 1 }

</bundles_post_ra>
